<compile_context>
chip_gen: v6e
topology: v6e:2x2x1
jax: 0.10.0
libtpu: 0.0.40
codegen_flags: <defaults>
</compile_context>

<pallas_src>
import numpy as np
import jax
import jax.numpy as jnp
from jax import lax
from jax.experimental import pallas as pl
from jax.experimental.pallas import tpu as pltpu


# ---------------------------------------------------------------------------
# Trace-time (numpy) PyTorch-exact 1-D interpolation weights
# (F.interpolate, mode='trilinear', align_corners=False is separable per axis).
# ---------------------------------------------------------------------------
def _interp_taps(out_size: int, in_size: int):
    """2-tap linear interpolation (indices + weights), PyTorch align_corners=False."""
    scale = in_size / out_size
    dst = np.arange(out_size, dtype=np.float64)
    src = np.clip(scale * (dst + 0.5) - 0.5, 0.0, None)   # PyTorch clamps negatives to 0
    i0 = np.clip(np.floor(src).astype(np.int64), 0, in_size - 1)
    i1 = np.minimum(i0 + 1, in_size - 1)
    l1 = (src - i0).astype(np.float32)
    l0 = (1.0 - l1).astype(np.float32)
    return i0, i1, l0, l1


def _interp_matrix_np(out_size: int, in_size: int) -> np.ndarray:
    """Dense [out_size, in_size] 1-D interpolation matrix built from the 2-tap weights."""
    i0, i1, l0, l1 = _interp_taps(out_size, in_size)
    m = np.zeros((out_size, in_size), np.float32)
    rows = np.arange(out_size)
    m[rows, i0] += l0
    m[rows, i1] += l1
    return m


# ---------------------------------------------------------------------------
# Kernel
# ---------------------------------------------------------------------------
def _make_disp_kernel(D, TH, Wpad, maxdisp):
    # manual unroll factor for the exp/accumulate pass (keeps the EUP fed)
    UNROLL = 4 if maxdisp % 4 == 0 else (2 if maxdisp % 2 == 0 else 1)

    def kernel(x_ref, wh_ref, wwt_ref, d0_ref, d1_ref, l0_ref, l1_ref,
               o_ref, t2_scr, m_scr, den_scr, num_scr):
        # x_ref  : (1, D, H, W)  one batch element, native dtype (resident across H tiles)
        # wh_ref : (TH, H)       H-axis interpolation rows for this output tile (f32)
        # wwt_ref: (W, Wpad)     W-axis interpolation, transposed + zero-padded to 128 lanes
        # d0/d1  : (maxdisp,) i32 SMEM   disparity-axis 2-tap source indices
        # l0/l1  : (maxdisp,) f32 SMEM   disparity-axis 2-tap weights
        # o_ref  : (1, TH, Wpad)
        # t2_scr : (D, TH, Wpad) VMEM    H/W-interpolated planes per source depth d
        # m/den/num_scr : (TH, Wpad) VMEM  streaming softmin state
        wh = wh_ref[...]                                     # (TH, H)  f32
        wwt = wwt_ref[...]                                   # (W, Wpad) f32

        # ---- separable H-then-W interpolation, one source-depth plane at a time ----
        for d in range(D):                                   # static unroll, O(1) live state
            xd = x_ref[0, d].astype(jnp.float32)             # (H, W)
            hd = jnp.dot(wh, xd, preferred_element_type=jnp.float32)        # (TH, W)
            t2_scr[d] = jnp.dot(hd, wwt, preferred_element_type=jnp.float32)  # (TH, Wpad)

        def yk(k):
            # 2-tap disparity-axis interpolation for output disparity k
            p0 = t2_scr[d0_ref[k]]
            p1 = t2_scr[d1_ref[k]]
            return l0_ref[k] * p0 + l1_ref[k] * p1           # (TH, Wpad)

        # ---- pass 1: running min over disparities (softmin stabilizer) ----
        m_scr[...] = yk(0)

        def pass1(k, c):
            m_scr[...] = jnp.minimum(m_scr[...], yk(k))
            return c

        lax.fori_loop(1, maxdisp, pass1, 0)

        # ---- pass 2: streamed softmin numerator / denominator ----
        den_scr[...] = jnp.zeros_like(den_scr)
        num_scr[...] = jnp.zeros_like(num_scr)

        def pass2(kk, c):
            base = kk * UNROLL
            m = m_scr[...]
            for u in range(UNROLL):
                k = base + u
                e = jnp.exp(m - yk(k))                       # EUP
                den_scr[...] = den_scr[...] + e
                num_scr[...] = num_scr[...] + k.astype(jnp.float32) * e
            return c

        lax.fori_loop(0, maxdisp // UNROLL, pass2, 0)

        den = den_scr[...]
        inv = pl.reciprocal(den, approx=True)                # EUP
        inv = inv * (2.0 - den * inv)                        # one Newton step (<< 1e-4 err)
        o_ref[0] = num_scr[...] * inv

    return kernel


# ---------------------------------------------------------------------------
# Wrapper
# ---------------------------------------------------------------------------
def _pick_tile(B, D, H, W, Hout, Wpad, in_itemsize):
    """Largest H-tile (multiple of 8, dividing Hout) under a per-step VMEM budget."""
    def vmem_bytes(th):
        return (2 * D * H * W * in_itemsize          # x block (double-buffered)
                + 2 * th * H * 4                     # wh block
                + 2 * W * Wpad * 4                   # wwt block
                + D * th * Wpad * 4                  # t2 scratch
                + 3 * th * Wpad * 4                  # m / den / num scratch
                + 2 * th * Wpad * 4)                 # output block (double-buffered)

    budget = 20 * 1024 * 1024                        # fits default scoped VMEM on v5e..v7x
    cands = [t for t in range(8, Hout + 1, 8) if Hout % t == 0]
    if not cands:
        cands = [Hout]                               # full-extent fallback (always legal)
    cands = sorted(set(cands), reverse=True)
    th = cands[-1]
    for t in cands:
        if vmem_bytes(t) > budget:
            continue
        if B == 1 and t == Hout and len(cands) > 1:
            continue                                 # keep >=2 grid steps for v7x's 2 TCs
        th = t
        break
    return th, vmem_bytes(th)


def disp_forward(x, maxdisp: int):
    """x: [B, 1, D, H, W] (NCDHW). Returns [B, 3H, 3W] float32."""
    B, C, D, H, W = x.shape
    assert C == 1, "Disp.forward squeezes dim 1, so channel must be 1"
    Hout, Wout = 3 * H, 3 * W
    Wpad = ((Wout + 127) // 128) * 128               # lane-dense output width

    # Trace-time constants: tiny separable interpolation weights / taps.
    wh = jnp.asarray(_interp_matrix_np(Hout, H))     # (Hout, H)
    wwt_np = np.zeros((W, Wpad), np.float32)
    wwt_np[:, :Wout] = _interp_matrix_np(Wout, W).T  # (W, Wpad), zero-padded columns
    wwt = jnp.asarray(wwt_np)
    d0, d1, l0, l1 = _interp_taps(maxdisp, D)
    d0 = jnp.asarray(d0, dtype=jnp.int32)
    d1 = jnp.asarray(d1, dtype=jnp.int32)
    l0 = jnp.asarray(l0, dtype=jnp.float32)
    l1 = jnp.asarray(l1, dtype=jnp.float32)

    xs = x[:, 0]                                     # (B, D, H, W), native dtype

    TH, vmem_est = _pick_tile(B, D, H, W, Hout, Wpad, xs.dtype.itemsize)
    grid = (B, Hout // TH)

    kernel = _make_disp_kernel(D, TH, Wpad, maxdisp)

    flops = 2.0 * B * D * Hout * (H * W + W * Wpad) + 10.0 * B * maxdisp * Hout * Wpad
    transcendentals = 1.0 * B * maxdisp * Hout * Wpad
    bytes_accessed = (xs.size * xs.dtype.itemsize + B * Hout * Wpad * 4
                      + (wh.size + wwt.size) * 4)

    out = pl.pallas_call(
        kernel,
        out_shape=jax.ShapeDtypeStruct((B, Hout, Wpad), jnp.float32),
        grid_spec=pltpu.PrefetchScalarGridSpec(
            num_scalar_prefetch=0,
            grid=grid,
            in_specs=[
                pl.BlockSpec((1, D, H, W), lambda b, j: (b, 0, 0, 0)),   # const over j
                pl.BlockSpec((TH, H), lambda b, j: (j, 0)),
                pl.BlockSpec((W, Wpad), lambda b, j: (0, 0)),
                pl.BlockSpec(memory_space=pltpu.MemorySpace.SMEM),       # d0
                pl.BlockSpec(memory_space=pltpu.MemorySpace.SMEM),       # d1
                pl.BlockSpec(memory_space=pltpu.MemorySpace.SMEM),       # l0
                pl.BlockSpec(memory_space=pltpu.MemorySpace.SMEM),       # l1
            ],
            out_specs=pl.BlockSpec((1, TH, Wpad), lambda b, j: (b, j, 0)),
            scratch_shapes=[
                pltpu.VMEM((D, TH, Wpad), jnp.float32),   # interpolated planes
                pltpu.VMEM((TH, Wpad), jnp.float32),      # running min
                pltpu.VMEM((TH, Wpad), jnp.float32),      # softmin denominator
                pltpu.VMEM((TH, Wpad), jnp.float32),      # disparity-weighted numerator
            ],
        ),
        compiler_params=pltpu.CompilerParams(
            dimension_semantics=("parallel", "parallel"),
            vmem_limit_bytes=int(min(max(vmem_est * 3 // 2, 32 * 1024 * 1024),
                                     48 * 1024 * 1024)),
        ),
        cost_estimate=pl.CostEstimate(
            flops=int(flops),
            transcendentals=int(transcendentals),
            bytes_accessed=int(bytes_accessed)),
    )(xs, wh, wwt, d0, d1, l0, l1)

    return out[:, :, :Wout]                           # strip lane padding


# ---------------------------------------------------------------------------
# Pure-JAX reference (same PyTorch-exact interpolation weights)
# ---------------------------------------------------------------------------
def _reference(x, maxdisp: int):
    B, C, D, H, W = x.shape
    wd = jnp.asarray(_interp_matrix_np(maxdisp, D))
    whm = jnp.asarray(_interp_matrix_np(3 * H, H))
    wwm = jnp.asarray(_interp_matrix_np(3 * W, W))
    y = jnp.einsum('bdhw,kd,ph,ow->bkpo', x[:, 0].astype(jnp.float32), wd, whm, wwm)
    p = jax.nn.softmax(-y, axis=1)                    # Softmin(dim=1)
    k = jnp.arange(maxdisp, dtype=jnp.float32)[None, :, None, None]
    return jnp.sum(p * k, axis=1)                     # [B, 3H, 3W]


if __name__ == "__main__":
    key = jax.random.PRNGKey(0)
    B, D, H, W = 2, 8, 8, 8
    maxdisp = 16
    x = jax.random.normal(key, (B, 1, D, H, W), dtype=jnp.float32)

    fwd = jax.jit(disp_forward, static_argnums=1)
    out = jax.block_until_ready(fwd(x, maxdisp))

    ref = _reference(x, maxdisp)
    assert out.shape == (B, 3 * H, 3 * W)
    assert np.allclose(np.asarray(out), np.asarray(ref), atol=1e-4, rtol=1e-4)
    print("KERNEL_OK")
</pallas_src>

<mosaic_0001>
module attributes {stable_mosaic.version = 11 : i64} {
  func.func @kernel(%arg0: i32, %arg1: i32, %arg2: memref<1x8x8x8xf32, #tpu.memory_space<vmem>>, %arg3: memref<24x8xf32, #tpu.memory_space<vmem>>, %arg4: memref<8x128xf32, #tpu.memory_space<vmem>>, %arg5: memref<16xi32, #tpu.memory_space<smem>>, %arg6: memref<16xi32, #tpu.memory_space<smem>>, %arg7: memref<16xf32, #tpu.memory_space<smem>>, %arg8: memref<16xf32, #tpu.memory_space<smem>>, %arg9: memref<1x24x128xf32, #tpu.memory_space<vmem>>, %arg10: memref<8x24x128xf32, #tpu.memory_space<vmem>>, %arg11: memref<24x128xf32, #tpu.memory_space<vmem>>, %arg12: memref<24x128xf32, #tpu.memory_space<vmem>>, %arg13: memref<24x128xf32, #tpu.memory_space<vmem>>) attributes {dimension_semantics = [#tpu.dimension_semantics<parallel>, #tpu.dimension_semantics<parallel>], iteration_bounds = array<i64: 2, 1>, scalar_prefetch = 0 : i64, scratch_operands = 4 : i64, tpu.core_type = #tpu.core_type<tc>, window_params = [{transform_indices = @transform_0, window_bounds = array<i64: 1, 8, 8, 8>}, {transform_indices = @transform_1, window_bounds = array<i64: 24, 8>}, {pipeline_mode = #tpu.pipeline_mode<synchronous>, transform_indices = @transform_2, window_bounds = array<i64: 8, 128>}, {transform_indices = @transform_3, window_bounds = array<i64: 16>}, {transform_indices = @transform_4, window_bounds = array<i64: 16>}, {transform_indices = @transform_5, window_bounds = array<i64: 16>}, {transform_indices = @transform_6, window_bounds = array<i64: 16>}, {transform_indices = @transform_7, window_bounds = array<i64: 1, 24, 128>}]} {
    %c0 = arith.constant 0 : index
    %c0_0 = arith.constant 0 : index
    %0 = vector.load %arg3[%c0, %c0_0] : memref<24x8xf32, #tpu.memory_space<vmem>>, vector<24x8xf32>
    %c0_1 = arith.constant 0 : index
    %c0_2 = arith.constant 0 : index
    %1 = vector.load %arg4[%c0_1, %c0_2] : memref<8x128xf32, #tpu.memory_space<vmem>>, vector<8x128xf32>
    %c0_3 = arith.constant 0 : index
    %c0_4 = arith.constant 0 : index
    %c0_5 = arith.constant 0 : index
    %c0_6 = arith.constant 0 : index
    %2 = vector.load %arg2[%c0_3, %c0_4, %c0_5, %c0_6] : memref<1x8x8x8xf32, #tpu.memory_space<vmem>>, vector<1x1x8x8xf32>
    %3 = vector.shape_cast %2 : vector<1x1x8x8xf32> to vector<8x8xf32>
    %cst = arith.constant dense<0.000000e+00> : vector<24x8xf32>
    %4 = tpu.matmul %0, %3, %cst {dimension_numbers = #tpu.dot_dimension_numbers<[1], [0], [0], [1], [0, 0, 1, 1], [], []>} : vector<24x8xf32>, vector<8x8xf32>, vector<24x8xf32> -> vector<24x8xf32>
    %cst_7 = arith.constant dense<0.000000e+00> : vector<24x128xf32>
    %5 = tpu.matmul %4, %1, %cst_7 {dimension_numbers = #tpu.dot_dimension_numbers<[1], [0], [0], [1], [0, 0, 1, 1], [], []>} : vector<24x8xf32>, vector<8x128xf32>, vector<24x128xf32> -> vector<24x128xf32>
    %c0_8 = arith.constant 0 : index
    %c0_9 = arith.constant 0 : index
    %c0_10 = arith.constant 0 : index
    %6 = vector.load %arg10[%c0_8, %c0_9, %c0_10] : memref<8x24x128xf32, #tpu.memory_space<vmem>>, vector<1x24x128xf32>
    %7 = vector.shape_cast %6 : vector<1x24x128xf32> to vector<24x128xf32>
    %8 = vector.shape_cast %5 : vector<24x128xf32> to vector<1x24x128xf32>
    tpu.vector_store %arg10[%c0_8, %c0_9, %c0_10], %8 {strides = array<i32>} : memref<8x24x128xf32, #tpu.memory_space<vmem>>, vector<1x24x128xf32>,
    %c0_11 = arith.constant 0 : index
    %c1 = arith.constant 1 : index
    %c0_12 = arith.constant 0 : index
    %c0_13 = arith.constant 0 : index
    %9 = vector.load %arg2[%c0_11, %c1, %c0_12, %c0_13] : memref<1x8x8x8xf32, #tpu.memory_space<vmem>>, vector<1x1x8x8xf32>
    %10 = vector.shape_cast %9 : vector<1x1x8x8xf32> to vector<8x8xf32>
    %cst_14 = arith.constant dense<0.000000e+00> : vector<24x8xf32>
    %11 = tpu.matmul %0, %10, %cst_14 {dimension_numbers = #tpu.dot_dimension_numbers<[1], [0], [0], [1], [0, 0, 1, 1], [], []>} : vector<24x8xf32>, vector<8x8xf32>, vector<24x8xf32> -> vector<24x8xf32>
    %cst_15 = arith.constant dense<0.000000e+00> : vector<24x128xf32>
    %12 = tpu.matmul %11, %1, %cst_15 {dimension_numbers = #tpu.dot_dimension_numbers<[1], [0], [0], [1], [0, 0, 1, 1], [], []>} : vector<24x8xf32>, vector<8x128xf32>, vector<24x128xf32> -> vector<24x128xf32>
    %c1_16 = arith.constant 1 : index
    %c0_17 = arith.constant 0 : index
    %c0_18 = arith.constant 0 : index
    %13 = vector.load %arg10[%c1_16, %c0_17, %c0_18] : memref<8x24x128xf32, #tpu.memory_space<vmem>>, vector<1x24x128xf32>
    %14 = vector.shape_cast %13 : vector<1x24x128xf32> to vector<24x128xf32>
    %15 = vector.shape_cast %12 : vector<24x128xf32> to vector<1x24x128xf32>
    tpu.vector_store %arg10[%c1_16, %c0_17, %c0_18], %15 {strides = array<i32>} : memref<8x24x128xf32, #tpu.memory_space<vmem>>, vector<1x24x128xf32>,
    %c0_19 = arith.constant 0 : index
    %c2 = arith.constant 2 : index
    %c0_20 = arith.constant 0 : index
    %c0_21 = arith.constant 0 : index
    %16 = vector.load %arg2[%c0_19, %c2, %c0_20, %c0_21] : memref<1x8x8x8xf32, #tpu.memory_space<vmem>>, vector<1x1x8x8xf32>
    %17 = vector.shape_cast %16 : vector<1x1x8x8xf32> to vector<8x8xf32>
    %cst_22 = arith.constant dense<0.000000e+00> : vector<24x8xf32>
    %18 = tpu.matmul %0, %17, %cst_22 {dimension_numbers = #tpu.dot_dimension_numbers<[1], [0], [0], [1], [0, 0, 1, 1], [], []>} : vector<24x8xf32>, vector<8x8xf32>, vector<24x8xf32> -> vector<24x8xf32>
    %cst_23 = arith.constant dense<0.000000e+00> : vector<24x128xf32>
    %19 = tpu.matmul %18, %1, %cst_23 {dimension_numbers = #tpu.dot_dimension_numbers<[1], [0], [0], [1], [0, 0, 1, 1], [], []>} : vector<24x8xf32>, vector<8x128xf32>, vector<24x128xf32> -> vector<24x128xf32>
    %c2_24 = arith.constant 2 : index
    %c0_25 = arith.constant 0 : index
    %c0_26 = arith.constant 0 : index
    %20 = vector.load %arg10[%c2_24, %c0_25, %c0_26] : memref<8x24x128xf32, #tpu.memory_space<vmem>>, vector<1x24x128xf32>
    %21 = vector.shape_cast %20 : vector<1x24x128xf32> to vector<24x128xf32>
    %22 = vector.shape_cast %19 : vector<24x128xf32> to vector<1x24x128xf32>
    tpu.vector_store %arg10[%c2_24, %c0_25, %c0_26], %22 {strides = array<i32>} : memref<8x24x128xf32, #tpu.memory_space<vmem>>, vector<1x24x128xf32>,
    %c0_27 = arith.constant 0 : index
    %c3 = arith.constant 3 : index
    %c0_28 = arith.constant 0 : index
    %c0_29 = arith.constant 0 : index
    %23 = vector.load %arg2[%c0_27, %c3, %c0_28, %c0_29] : memref<1x8x8x8xf32, #tpu.memory_space<vmem>>, vector<1x1x8x8xf32>
    %24 = vector.shape_cast %23 : vector<1x1x8x8xf32> to vector<8x8xf32>
    %cst_30 = arith.constant dense<0.000000e+00> : vector<24x8xf32>
    %25 = tpu.matmul %0, %24, %cst_30 {dimension_numbers = #tpu.dot_dimension_numbers<[1], [0], [0], [1], [0, 0, 1, 1], [], []>} : vector<24x8xf32>, vector<8x8xf32>, vector<24x8xf32> -> vector<24x8xf32>
    %cst_31 = arith.constant dense<0.000000e+00> : vector<24x128xf32>
    %26 = tpu.matmul %25, %1, %cst_31 {dimension_numbers = #tpu.dot_dimension_numbers<[1], [0], [0], [1], [0, 0, 1, 1], [], []>} : vector<24x8xf32>, vector<8x128xf32>, vector<24x128xf32> -> vector<24x128xf32>
    %c3_32 = arith.constant 3 : index
    %c0_33 = arith.constant 0 : index
    %c0_34 = arith.constant 0 : index
    %27 = vector.load %arg10[%c3_32, %c0_33, %c0_34] : memref<8x24x128xf32, #tpu.memory_space<vmem>>, vector<1x24x128xf32>
    %28 = vector.shape_cast %27 : vector<1x24x128xf32> to vector<24x128xf32>
    %29 = vector.shape_cast %26 : vector<24x128xf32> to vector<1x24x128xf32>
    tpu.vector_store %arg10[%c3_32, %c0_33, %c0_34], %29 {strides = array<i32>} : memref<8x24x128xf32, #tpu.memory_space<vmem>>, vector<1x24x128xf32>,
    %c0_35 = arith.constant 0 : index
    %c4 = arith.constant 4 : index
    %c0_36 = arith.constant 0 : index
    %c0_37 = arith.constant 0 : index
    %30 = vector.load %arg2[%c0_35, %c4, %c0_36, %c0_37] : memref<1x8x8x8xf32, #tpu.memory_space<vmem>>, vector<1x1x8x8xf32>
    %31 = vector.shape_cast %30 : vector<1x1x8x8xf32> to vector<8x8xf32>
    %cst_38 = arith.constant dense<0.000000e+00> : vector<24x8xf32>
    %32 = tpu.matmul %0, %31, %cst_38 {dimension_numbers = #tpu.dot_dimension_numbers<[1], [0], [0], [1], [0, 0, 1, 1], [], []>} : vector<24x8xf32>, vector<8x8xf32>, vector<24x8xf32> -> vector<24x8xf32>
    %cst_39 = arith.constant dense<0.000000e+00> : vector<24x128xf32>
    %33 = tpu.matmul %32, %1, %cst_39 {dimension_numbers = #tpu.dot_dimension_numbers<[1], [0], [0], [1], [0, 0, 1, 1], [], []>} : vector<24x8xf32>, vector<8x128xf32>, vector<24x128xf32> -> vector<24x128xf32>
    %c4_40 = arith.constant 4 : index
    %c0_41 = arith.constant 0 : index
    %c0_42 = arith.constant 0 : index
    %34 = vector.load %arg10[%c4_40, %c0_41, %c0_42] : memref<8x24x128xf32, #tpu.memory_space<vmem>>, vector<1x24x128xf32>
    %35 = vector.shape_cast %34 : vector<1x24x128xf32> to vector<24x128xf32>
    %36 = vector.shape_cast %33 : vector<24x128xf32> to vector<1x24x128xf32>
    tpu.vector_store %arg10[%c4_40, %c0_41, %c0_42], %36 {strides = array<i32>} : memref<8x24x128xf32, #tpu.memory_space<vmem>>, vector<1x24x128xf32>,
    %c0_43 = arith.constant 0 : index
    %c5 = arith.constant 5 : index
    %c0_44 = arith.constant 0 : index
    %c0_45 = arith.constant 0 : index
    %37 = vector.load %arg2[%c0_43, %c5, %c0_44, %c0_45] : memref<1x8x8x8xf32, #tpu.memory_space<vmem>>, vector<1x1x8x8xf32>
    %38 = vector.shape_cast %37 : vector<1x1x8x8xf32> to vector<8x8xf32>
    %cst_46 = arith.constant dense<0.000000e+00> : vector<24x8xf32>
    %39 = tpu.matmul %0, %38, %cst_46 {dimension_numbers = #tpu.dot_dimension_numbers<[1], [0], [0], [1], [0, 0, 1, 1], [], []>} : vector<24x8xf32>, vector<8x8xf32>, vector<24x8xf32> -> vector<24x8xf32>
    %cst_47 = arith.constant dense<0.000000e+00> : vector<24x128xf32>
    %40 = tpu.matmul %39, %1, %cst_47 {dimension_numbers = #tpu.dot_dimension_numbers<[1], [0], [0], [1], [0, 0, 1, 1], [], []>} : vector<24x8xf32>, vector<8x128xf32>, vector<24x128xf32> -> vector<24x128xf32>
    %c5_48 = arith.constant 5 : index
    %c0_49 = arith.constant 0 : index
    %c0_50 = arith.constant 0 : index
    %41 = vector.load %arg10[%c5_48, %c0_49, %c0_50] : memref<8x24x128xf32, #tpu.memory_space<vmem>>, vector<1x24x128xf32>
    %42 = vector.shape_cast %41 : vector<1x24x128xf32> to vector<24x128xf32>
    %43 = vector.shape_cast %40 : vector<24x128xf32> to vector<1x24x128xf32>
    tpu.vector_store %arg10[%c5_48, %c0_49, %c0_50], %43 {strides = array<i32>} : memref<8x24x128xf32, #tpu.memory_space<vmem>>, vector<1x24x128xf32>,
    %c0_51 = arith.constant 0 : index
    %c6 = arith.constant 6 : index
    %c0_52 = arith.constant 0 : index
    %c0_53 = arith.constant 0 : index
    %44 = vector.load %arg2[%c0_51, %c6, %c0_52, %c0_53] : memref<1x8x8x8xf32, #tpu.memory_space<vmem>>, vector<1x1x8x8xf32>
    %45 = vector.shape_cast %44 : vector<1x1x8x8xf32> to vector<8x8xf32>
    %cst_54 = arith.constant dense<0.000000e+00> : vector<24x8xf32>
    %46 = tpu.matmul %0, %45, %cst_54 {dimension_numbers = #tpu.dot_dimension_numbers<[1], [0], [0], [1], [0, 0, 1, 1], [], []>} : vector<24x8xf32>, vector<8x8xf32>, vector<24x8xf32> -> vector<24x8xf32>
    %cst_55 = arith.constant dense<0.000000e+00> : vector<24x128xf32>
    %47 = tpu.matmul %46, %1, %cst_55 {dimension_numbers = #tpu.dot_dimension_numbers<[1], [0], [0], [1], [0, 0, 1, 1], [], []>} : vector<24x8xf32>, vector<8x128xf32>, vector<24x128xf32> -> vector<24x128xf32>
    %c6_56 = arith.constant 6 : index
    %c0_57 = arith.constant 0 : index
    %c0_58 = arith.constant 0 : index
    %48 = vector.load %arg10[%c6_56, %c0_57, %c0_58] : memref<8x24x128xf32, #tpu.memory_space<vmem>>, vector<1x24x128xf32>
    %49 = vector.shape_cast %48 : vector<1x24x128xf32> to vector<24x128xf32>
    %50 = vector.shape_cast %47 : vector<24x128xf32> to vector<1x24x128xf32>
    tpu.vector_store %arg10[%c6_56, %c0_57, %c0_58], %50 {strides = array<i32>} : memref<8x24x128xf32, #tpu.memory_space<vmem>>, vector<1x24x128xf32>,
    %c0_59 = arith.constant 0 : index
    %c7 = arith.constant 7 : index
    %c0_60 = arith.constant 0 : index
    %c0_61 = arith.constant 0 : index
    %51 = vector.load %arg2[%c0_59, %c7, %c0_60, %c0_61] : memref<1x8x8x8xf32, #tpu.memory_space<vmem>>, vector<1x1x8x8xf32>
    %52 = vector.shape_cast %51 : vector<1x1x8x8xf32> to vector<8x8xf32>
    %cst_62 = arith.constant dense<0.000000e+00> : vector<24x8xf32>
    %53 = tpu.matmul %0, %52, %cst_62 {dimension_numbers = #tpu.dot_dimension_numbers<[1], [0], [0], [1], [0, 0, 1, 1], [], []>} : vector<24x8xf32>, vector<8x8xf32>, vector<24x8xf32> -> vector<24x8xf32>
    %cst_63 = arith.constant dense<0.000000e+00> : vector<24x128xf32>
    %54 = tpu.matmul %53, %1, %cst_63 {dimension_numbers = #tpu.dot_dimension_numbers<[1], [0], [0], [1], [0, 0, 1, 1], [], []>} : vector<24x8xf32>, vector<8x128xf32>, vector<24x128xf32> -> vector<24x128xf32>
    %c7_64 = arith.constant 7 : index
    %c0_65 = arith.constant 0 : index
    %c0_66 = arith.constant 0 : index
    %55 = vector.load %arg10[%c7_64, %c0_65, %c0_66] : memref<8x24x128xf32, #tpu.memory_space<vmem>>, vector<1x24x128xf32>
    %56 = vector.shape_cast %55 : vector<1x24x128xf32> to vector<24x128xf32>
    %57 = vector.shape_cast %54 : vector<24x128xf32> to vector<1x24x128xf32>
    tpu.vector_store %arg10[%c7_64, %c0_65, %c0_66], %57 {strides = array<i32>} : memref<8x24x128xf32, #tpu.memory_space<vmem>>, vector<1x24x128xf32>,
    %c0_67 = arith.constant 0 : index
    %58 = memref.load %arg5[%c0_67] : memref<16xi32, #tpu.memory_space<smem>>
    %59 = arith.index_cast %58 : i32 to index
    %c0_68 = arith.constant 0 : index
    %c0_69 = arith.constant 0 : index
    %60 = vector.load %arg10[%59, %c0_68, %c0_69] : memref<8x24x128xf32, #tpu.memory_space<vmem>>, vector<1x24x128xf32>
    %61 = vector.shape_cast %60 : vector<1x24x128xf32> to vector<24x128xf32>
    %c0_70 = arith.constant 0 : index
    %62 = memref.load %arg6[%c0_70] : memref<16xi32, #tpu.memory_space<smem>>
    %63 = arith.index_cast %62 : i32 to index
    %c0_71 = arith.constant 0 : index
    %c0_72 = arith.constant 0 : index
    %64 = vector.load %arg10[%63, %c0_71, %c0_72] : memref<8x24x128xf32, #tpu.memory_space<vmem>>, vector<1x24x128xf32>
    %65 = vector.shape_cast %64 : vector<1x24x128xf32> to vector<24x128xf32>
    %c0_73 = arith.constant 0 : index
    %66 = memref.load %arg7[%c0_73] : memref<16xf32, #tpu.memory_space<smem>>
    %67 = vector.broadcast %66 : f32 to vector<24x128xf32>
    %68 = arith.mulf %67, %61 : vector<24x128xf32>
    %c0_74 = arith.constant 0 : index
    %69 = memref.load %arg8[%c0_74] : memref<16xf32, #tpu.memory_space<smem>>
    %70 = vector.broadcast %69 : f32 to vector<24x128xf32>
    %71 = arith.mulf %70, %65 : vector<24x128xf32>
    %72 = arith.addf %68, %71 : vector<24x128xf32>
    %c0_75 = arith.constant 0 : index
    %c0_76 = arith.constant 0 : index
    %73 = vector.load %arg11[%c0_75, %c0_76] : memref<24x128xf32, #tpu.memory_space<vmem>>, vector<24x128xf32>
    tpu.vector_store %arg11[%c0_75, %c0_76], %72 {strides = array<i32>} : memref<24x128xf32, #tpu.memory_space<vmem>>, vector<24x128xf32>,
    %c1_i32 = arith.constant 1 : i32
    %c15_i32 = arith.constant 15 : i32
    %74 = arith.addi %c1_i32, %c15_i32 : i32
    %c1_i32_77 = arith.constant 1 : i32
    scf.for %arg14 = %c1_i32 to %74 step %c1_i32_77  : i32 {
      %c0_95 = arith.constant 0 : index
      %c0_96 = arith.constant 0 : index
      %91 = vector.load %arg11[%c0_95, %c0_96] : memref<24x128xf32, #tpu.memory_space<vmem>>, vector<24x128xf32>
      %92 = arith.index_cast %arg14 : i32 to index
      %93 = memref.load %arg5[%92] : memref<16xi32, #tpu.memory_space<smem>>
      %94 = arith.index_cast %93 : i32 to index
      %c0_97 = arith.constant 0 : index
      %c0_98 = arith.constant 0 : index
      %95 = vector.load %arg10[%94, %c0_97, %c0_98] : memref<8x24x128xf32, #tpu.memory_space<vmem>>, vector<1x24x128xf32>
      %96 = vector.shape_cast %95 : vector<1x24x128xf32> to vector<24x128xf32>
      %97 = arith.index_cast %arg14 : i32 to index
      %98 = memref.load %arg6[%97] : memref<16xi32, #tpu.memory_space<smem>>
      %99 = arith.index_cast %98 : i32 to index
      %c0_99 = arith.constant 0 : index
      %c0_100 = arith.constant 0 : index
      %100 = vector.load %arg10[%99, %c0_99, %c0_100] : memref<8x24x128xf32, #tpu.memory_space<vmem>>, vector<1x24x128xf32>
      %101 = vector.shape_cast %100 : vector<1x24x128xf32> to vector<24x128xf32>
      %102 = arith.index_cast %arg14 : i32 to index
      %103 = memref.load %arg7[%102] : memref<16xf32, #tpu.memory_space<smem>>
      %104 = vector.broadcast %103 : f32 to vector<24x128xf32>
      %105 = arith.mulf %104, %96 : vector<24x128xf32>
      %106 = arith.index_cast %arg14 : i32 to index
      %107 = memref.load %arg8[%106] : memref<16xf32, #tpu.memory_space<smem>>
      %108 = vector.broadcast %107 : f32 to vector<24x128xf32>
      %109 = arith.mulf %108, %101 : vector<24x128xf32>
      %110 = arith.addf %105, %109 : vector<24x128xf32>
      %111 = arith.minimumf %91, %110 : vector<24x128xf32>
      %c0_101 = arith.constant 0 : index
      %c0_102 = arith.constant 0 : index
      %112 = vector.load %arg11[%c0_101, %c0_102] : memref<24x128xf32, #tpu.memory_space<vmem>>, vector<24x128xf32>
      tpu.vector_store %arg11[%c0_101, %c0_102], %111 {strides = array<i32>} : memref<24x128xf32, #tpu.memory_space<vmem>>, vector<24x128xf32>,
    }
    %c15_i32_78 = arith.constant 15 : i32
    %cst_79 = arith.constant 0.000000e+00 : f32
    %75 = vector.broadcast %cst_79 : f32 to vector<24x128xf32>
    %c0_80 = arith.constant 0 : index
    %c0_81 = arith.constant 0 : index
    %76 = vector.load %arg12[%c0_80, %c0_81] : memref<24x128xf32, #tpu.memory_space<vmem>>, vector<24x128xf32>
    tpu.vector_store %arg12[%c0_80, %c0_81], %75 {strides = array<i32>} : memref<24x128xf32, #tpu.memory_space<vmem>>, vector<24x128xf32>,
    %cst_82 = arith.constant 0.000000e+00 : f32
    %77 = vector.broadcast %cst_82 : f32 to vector<24x128xf32>
    %c0_83 = arith.constant 0 : index
    %c0_84 = arith.constant 0 : index
    %78 = vector.load %arg13[%c0_83, %c0_84] : memref<24x128xf32, #tpu.memory_space<vmem>>, vector<24x128xf32>
    tpu.vector_store %arg13[%c0_83, %c0_84], %77 {strides = array<i32>} : memref<24x128xf32, #tpu.memory_space<vmem>>, vector<24x128xf32>,
    %c0_i32 = arith.constant 0 : i32
    %c4_i32 = arith.constant 4 : i32
    %79 = arith.addi %c0_i32, %c4_i32 : i32
    %c1_i32_85 = arith.constant 1 : i32
    scf.for %arg14 = %c0_i32 to %79 step %c1_i32_85  : i32 {
      %c4_i32_95 = arith.constant 4 : i32
      %91 = arith.muli %arg14, %c4_i32_95 : i32
      %c0_96 = arith.constant 0 : index
      %c0_97 = arith.constant 0 : index
      %92 = vector.load %arg11[%c0_96, %c0_97] : memref<24x128xf32, #tpu.memory_space<vmem>>, vector<24x128xf32>
      %c0_i32_98 = arith.constant 0 : i32
      %93 = arith.addi %91, %c0_i32_98 : i32
      %94 = arith.index_cast %93 : i32 to index
      %95 = memref.load %arg5[%94] : memref<16xi32, #tpu.memory_space<smem>>
      %96 = arith.index_cast %95 : i32 to index
      %c0_99 = arith.constant 0 : index
      %c0_100 = arith.constant 0 : index
      %97 = vector.load %arg10[%96, %c0_99, %c0_100] : memref<8x24x128xf32, #tpu.memory_space<vmem>>, vector<1x24x128xf32>
      %98 = vector.shape_cast %97 : vector<1x24x128xf32> to vector<24x128xf32>
      %99 = arith.index_cast %93 : i32 to index
      %100 = memref.load %arg6[%99] : memref<16xi32, #tpu.memory_space<smem>>
      %101 = arith.index_cast %100 : i32 to index
      %c0_101 = arith.constant 0 : index
      %c0_102 = arith.constant 0 : index
      %102 = vector.load %arg10[%101, %c0_101, %c0_102] : memref<8x24x128xf32, #tpu.memory_space<vmem>>, vector<1x24x128xf32>
      %103 = vector.shape_cast %102 : vector<1x24x128xf32> to vector<24x128xf32>
      %104 = arith.index_cast %93 : i32 to index
      %105 = memref.load %arg7[%104] : memref<16xf32, #tpu.memory_space<smem>>
      %106 = vector.broadcast %105 : f32 to vector<24x128xf32>
      %107 = arith.mulf %106, %98 : vector<24x128xf32>
      %108 = arith.index_cast %93 : i32 to index
      %109 = memref.load %arg8[%108] : memref<16xf32, #tpu.memory_space<smem>>
      %110 = vector.broadcast %109 : f32 to vector<24x128xf32>
      %111 = arith.mulf %110, %103 : vector<24x128xf32>
      %112 = arith.addf %107, %111 : vector<24x128xf32>
      %113 = arith.subf %92, %112 : vector<24x128xf32>
      %114 = math.exp %113 : vector<24x128xf32>
      %c0_103 = arith.constant 0 : index
      %c0_104 = arith.constant 0 : index
      %115 = vector.load %arg12[%c0_103, %c0_104] : memref<24x128xf32, #tpu.memory_space<vmem>>, vector<24x128xf32>
      %116 = arith.addf %115, %114 : vector<24x128xf32>
      %c0_105 = arith.constant 0 : index
      %c0_106 = arith.constant 0 : index
      %117 = vector.load %arg12[%c0_105, %c0_106] : memref<24x128xf32, #tpu.memory_space<vmem>>, vector<24x128xf32>
      tpu.vector_store %arg12[%c0_105, %c0_106], %116 {strides = array<i32>} : memref<24x128xf32, #tpu.memory_space<vmem>>, vector<24x128xf32>,
      %c0_107 = arith.constant 0 : index
      %c0_108 = arith.constant 0 : index
      %118 = vector.load %arg13[%c0_107, %c0_108] : memref<24x128xf32, #tpu.memory_space<vmem>>, vector<24x128xf32>
      %119 = arith.sitofp %93 : i32 to f32
      %120 = vector.broadcast %119 : f32 to vector<24x128xf32>
      %121 = arith.mulf %120, %114 : vector<24x128xf32>
      %122 = arith.addf %118, %121 : vector<24x128xf32>
      %c0_109 = arith.constant 0 : index
      %c0_110 = arith.constant 0 : index
      %123 = vector.load %arg13[%c0_109, %c0_110] : memref<24x128xf32, #tpu.memory_space<vmem>>, vector<24x128xf32>
      tpu.vector_store %arg13[%c0_109, %c0_110], %122 {strides = array<i32>} : memref<24x128xf32, #tpu.memory_space<vmem>>, vector<24x128xf32>,
      %c1_i32_111 = arith.constant 1 : i32
      %124 = arith.addi %91, %c1_i32_111 : i32
      %125 = arith.index_cast %124 : i32 to index
      %126 = memref.load %arg5[%125] : memref<16xi32, #tpu.memory_space<smem>>
      %127 = arith.index_cast %126 : i32 to index
      %c0_112 = arith.constant 0 : index
      %c0_113 = arith.constant 0 : index
      %128 = vector.load %arg10[%127, %c0_112, %c0_113] : memref<8x24x128xf32, #tpu.memory_space<vmem>>, vector<1x24x128xf32>
      %129 = vector.shape_cast %128 : vector<1x24x128xf32> to vector<24x128xf32>
      %130 = arith.index_cast %124 : i32 to index
      %131 = memref.load %arg6[%130] : memref<16xi32, #tpu.memory_space<smem>>
      %132 = arith.index_cast %131 : i32 to index
      %c0_114 = arith.constant 0 : index
      %c0_115 = arith.constant 0 : index
      %133 = vector.load %arg10[%132, %c0_114, %c0_115] : memref<8x24x128xf32, #tpu.memory_space<vmem>>, vector<1x24x128xf32>
      %134 = vector.shape_cast %133 : vector<1x24x128xf32> to vector<24x128xf32>
      %135 = arith.index_cast %124 : i32 to index
      %136 = memref.load %arg7[%135] : memref<16xf32, #tpu.memory_space<smem>>
      %137 = vector.broadcast %136 : f32 to vector<24x128xf32>
      %138 = arith.mulf %137, %129 : vector<24x128xf32>
      %139 = arith.index_cast %124 : i32 to index
      %140 = memref.load %arg8[%139] : memref<16xf32, #tpu.memory_space<smem>>
      %141 = vector.broadcast %140 : f32 to vector<24x128xf32>
      %142 = arith.mulf %141, %134 : vector<24x128xf32>
      %143 = arith.addf %138, %142 : vector<24x128xf32>
      %144 = arith.subf %92, %143 : vector<24x128xf32>
      %145 = math.exp %144 : vector<24x128xf32>
      %c0_116 = arith.constant 0 : index
      %c0_117 = arith.constant 0 : index
      %146 = vector.load %arg12[%c0_116, %c0_117] : memref<24x128xf32, #tpu.memory_space<vmem>>, vector<24x128xf32>
      %147 = arith.addf %146, %145 : vector<24x128xf32>
      %c0_118 = arith.constant 0 : index
      %c0_119 = arith.constant 0 : index
      %148 = vector.load %arg12[%c0_118, %c0_119] : memref<24x128xf32, #tpu.memory_space<vmem>>, vector<24x128xf32>
      tpu.vector_store %arg12[%c0_118, %c0_119], %147 {strides = array<i32>} : memref<24x128xf32, #tpu.memory_space<vmem>>, vector<24x128xf32>,
      %c0_120 = arith.constant 0 : index
      %c0_121 = arith.constant 0 : index
      %149 = vector.load %arg13[%c0_120, %c0_121] : memref<24x128xf32, #tpu.memory_space<vmem>>, vector<24x128xf32>
      %150 = arith.sitofp %124 : i32 to f32
      %151 = vector.broadcast %150 : f32 to vector<24x128xf32>
      %152 = arith.mulf %151, %145 : vector<24x128xf32>
      %153 = arith.addf %149, %152 : vector<24x128xf32>
      %c0_122 = arith.constant 0 : index
      %c0_123 = arith.constant 0 : index
      %154 = vector.load %arg13[%c0_122, %c0_123] : memref<24x128xf32, #tpu.memory_space<vmem>>, vector<24x128xf32>
      tpu.vector_store %arg13[%c0_122, %c0_123], %153 {strides = array<i32>} : memref<24x128xf32, #tpu.memory_space<vmem>>, vector<24x128xf32>,
      %c2_i32 = arith.constant 2 : i32
      %155 = arith.addi %91, %c2_i32 : i32
      %156 = arith.index_cast %155 : i32 to index
      %157 = memref.load %arg5[%156] : memref<16xi32, #tpu.memory_space<smem>>
      %158 = arith.index_cast %157 : i32 to index
      %c0_124 = arith.constant 0 : index
      %c0_125 = arith.constant 0 : index
      %159 = vector.load %arg10[%158, %c0_124, %c0_125] : memref<8x24x128xf32, #tpu.memory_space<vmem>>, vector<1x24x128xf32>
      %160 = vector.shape_cast %159 : vector<1x24x128xf32> to vector<24x128xf32>
      %161 = arith.index_cast %155 : i32 to index
      %162 = memref.load %arg6[%161] : memref<16xi32, #tpu.memory_space<smem>>
      %163 = arith.index_cast %162 : i32 to index
      %c0_126 = arith.constant 0 : index
      %c0_127 = arith.constant 0 : index
      %164 = vector.load %arg10[%163, %c0_126, %c0_127] : memref<8x24x128xf32, #tpu.memory_space<vmem>>, vector<1x24x128xf32>
      %165 = vector.shape_cast %164 : vector<1x24x128xf32> to vector<24x128xf32>
      %166 = arith.index_cast %155 : i32 to index
      %167 = memref.load %arg7[%166] : memref<16xf32, #tpu.memory_space<smem>>
      %168 = vector.broadcast %167 : f32 to vector<24x128xf32>
      %169 = arith.mulf %168, %160 : vector<24x128xf32>
      %170 = arith.index_cast %155 : i32 to index
      %171 = memref.load %arg8[%170] : memref<16xf32, #tpu.memory_space<smem>>
      %172 = vector.broadcast %171 : f32 to vector<24x128xf32>
      %173 = arith.mulf %172, %165 : vector<24x128xf32>
      %174 = arith.addf %169, %173 : vector<24x128xf32>
      %175 = arith.subf %92, %174 : vector<24x128xf32>
      %176 = math.exp %175 : vector<24x128xf32>
      %c0_128 = arith.constant 0 : index
      %c0_129 = arith.constant 0 : index
      %177 = vector.load %arg12[%c0_128, %c0_129] : memref<24x128xf32, #tpu.memory_space<vmem>>, vector<24x128xf32>
      %178 = arith.addf %177, %176 : vector<24x128xf32>
      %c0_130 = arith.constant 0 : index
      %c0_131 = arith.constant 0 : index
      %179 = vector.load %arg12[%c0_130, %c0_131] : memref<24x128xf32, #tpu.memory_space<vmem>>, vector<24x128xf32>
      tpu.vector_store %arg12[%c0_130, %c0_131], %178 {strides = array<i32>} : memref<24x128xf32, #tpu.memory_space<vmem>>, vector<24x128xf32>,
      %c0_132 = arith.constant 0 : index
      %c0_133 = arith.constant 0 : index
      %180 = vector.load %arg13[%c0_132, %c0_133] : memref<24x128xf32, #tpu.memory_space<vmem>>, vector<24x128xf32>
      %181 = arith.sitofp %155 : i32 to f32
      %182 = vector.broadcast %181 : f32 to vector<24x128xf32>
      %183 = arith.mulf %182, %176 : vector<24x128xf32>
      %184 = arith.addf %180, %183 : vector<24x128xf32>
      %c0_134 = arith.constant 0 : index
      %c0_135 = arith.constant 0 : index
      %185 = vector.load %arg13[%c0_134, %c0_135] : memref<24x128xf32, #tpu.memory_space<vmem>>, vector<24x128xf32>
      tpu.vector_store %arg13[%c0_134, %c0_135], %184 {strides = array<i32>} : memref<24x128xf32, #tpu.memory_space<vmem>>, vector<24x128xf32>,
      %c3_i32 = arith.constant 3 : i32
      %186 = arith.addi %91, %c3_i32 : i32
      %187 = arith.index_cast %186 : i32 to index
      %188 = memref.load %arg5[%187] : memref<16xi32, #tpu.memory_space<smem>>
      %189 = arith.index_cast %188 : i32 to index
      %c0_136 = arith.constant 0 : index
      %c0_137 = arith.constant 0 : index
      %190 = vector.load %arg10[%189, %c0_136, %c0_137] : memref<8x24x128xf32, #tpu.memory_space<vmem>>, vector<1x24x128xf32>
      %191 = vector.shape_cast %190 : vector<1x24x128xf32> to vector<24x128xf32>
      %192 = arith.index_cast %186 : i32 to index
      %193 = memref.load %arg6[%192] : memref<16xi32, #tpu.memory_space<smem>>
      %194 = arith.index_cast %193 : i32 to index
      %c0_138 = arith.constant 0 : index
      %c0_139 = arith.constant 0 : index
      %195 = vector.load %arg10[%194, %c0_138, %c0_139] : memref<8x24x128xf32, #tpu.memory_space<vmem>>, vector<1x24x128xf32>
      %196 = vector.shape_cast %195 : vector<1x24x128xf32> to vector<24x128xf32>
      %197 = arith.index_cast %186 : i32 to index
      %198 = memref.load %arg7[%197] : memref<16xf32, #tpu.memory_space<smem>>
      %199 = vector.broadcast %198 : f32 to vector<24x128xf32>
      %200 = arith.mulf %199, %191 : vector<24x128xf32>
      %201 = arith.index_cast %186 : i32 to index
      %202 = memref.load %arg8[%201] : memref<16xf32, #tpu.memory_space<smem>>
      %203 = vector.broadcast %202 : f32 to vector<24x128xf32>
      %204 = arith.mulf %203, %196 : vector<24x128xf32>
      %205 = arith.addf %200, %204 : vector<24x128xf32>
      %206 = arith.subf %92, %205 : vector<24x128xf32>
      %207 = math.exp %206 : vector<24x128xf32>
      %c0_140 = arith.constant 0 : index
      %c0_141 = arith.constant 0 : index
      %208 = vector.load %arg12[%c0_140, %c0_141] : memref<24x128xf32, #tpu.memory_space<vmem>>, vector<24x128xf32>
      %209 = arith.addf %208, %207 : vector<24x128xf32>
      %c0_142 = arith.constant 0 : index
      %c0_143 = arith.constant 0 : index
      %210 = vector.load %arg12[%c0_142, %c0_143] : memref<24x128xf32, #tpu.memory_space<vmem>>, vector<24x128xf32>
      tpu.vector_store %arg12[%c0_142, %c0_143], %209 {strides = array<i32>} : memref<24x128xf32, #tpu.memory_space<vmem>>, vector<24x128xf32>,
      %c0_144 = arith.constant 0 : index
      %c0_145 = arith.constant 0 : index
      %211 = vector.load %arg13[%c0_144, %c0_145] : memref<24x128xf32, #tpu.memory_space<vmem>>, vector<24x128xf32>
      %212 = arith.sitofp %186 : i32 to f32
      %213 = vector.broadcast %212 : f32 to vector<24x128xf32>
      %214 = arith.mulf %213, %207 : vector<24x128xf32>
      %215 = arith.addf %211, %214 : vector<24x128xf32>
      %c0_146 = arith.constant 0 : index
      %c0_147 = arith.constant 0 : index
      %216 = vector.load %arg13[%c0_146, %c0_147] : memref<24x128xf32, #tpu.memory_space<vmem>>, vector<24x128xf32>
      tpu.vector_store %arg13[%c0_146, %c0_147], %215 {strides = array<i32>} : memref<24x128xf32, #tpu.memory_space<vmem>>, vector<24x128xf32>,
    }
    %c4_i32_86 = arith.constant 4 : i32
    %c0_87 = arith.constant 0 : index
    %c0_88 = arith.constant 0 : index
    %80 = vector.load %arg12[%c0_87, %c0_88] : memref<24x128xf32, #tpu.memory_space<vmem>>, vector<24x128xf32>
    %81 = tpu.reciprocal %80 {approx = true} : vector<24x128xf32> -> vector<24x128xf32>
    %82 = arith.mulf %80, %81 : vector<24x128xf32>
    %cst_89 = arith.constant 2.000000e+00 : f32
    %83 = vector.broadcast %cst_89 : f32 to vector<24x128xf32>
    %84 = arith.subf %83, %82 : vector<24x128xf32>
    %85 = arith.mulf %81, %84 : vector<24x128xf32>
    %c0_90 = arith.constant 0 : index
    %c0_91 = arith.constant 0 : index
    %86 = vector.load %arg13[%c0_90, %c0_91] : memref<24x128xf32, #tpu.memory_space<vmem>>, vector<24x128xf32>
    %87 = arith.mulf %86, %85 : vector<24x128xf32>
    %c0_92 = arith.constant 0 : index
    %c0_93 = arith.constant 0 : index
    %c0_94 = arith.constant 0 : index
    %88 = vector.load %arg9[%c0_92, %c0_93, %c0_94] : memref<1x24x128xf32, #tpu.memory_space<vmem>>, vector<1x24x128xf32>
    %89 = vector.shape_cast %88 : vector<1x24x128xf32> to vector<24x128xf32>
    %90 = vector.shape_cast %87 : vector<24x128xf32> to vector<1x24x128xf32>
    tpu.vector_store %arg9[%c0_92, %c0_93, %c0_94], %90 {strides = array<i32>} : memref<1x24x128xf32, #tpu.memory_space<vmem>>, vector<1x24x128xf32>,
    return
  }
  func.func @transform_0(%arg0: i32, %arg1: i32) -> (i32, i32, i32, i32) {
    %c0_i32 = arith.constant 0 : i32
    %c0_i32_0 = arith.constant 0 : i32
    %c0_i32_1 = arith.constant 0 : i32
    %c0_i32_2 = arith.constant 0 : i32
    return %arg0, %c0_i32, %c0_i32_0, %c0_i32_1 : i32, i32, i32, i32
  }
  func.func @transform_1(%arg0: i32, %arg1: i32) -> (i32, i32) {
    %c0_i32 = arith.constant 0 : i32
    %c0_i32_0 = arith.constant 0 : i32
    return %arg1, %c0_i32 : i32, i32
  }
  func.func @transform_2(%arg0: i32, %arg1: i32) -> (i32, i32) {
    %c0_i32 = arith.constant 0 : i32
    %c0_i32_0 = arith.constant 0 : i32
    %c0_i32_1 = arith.constant 0 : i32
    return %c0_i32, %c0_i32_0 : i32, i32
  }
  func.func @transform_3(%arg0: i32, %arg1: i32) -> i32 {
    %c0_i32 = arith.constant 0 : i32
    %c0_i32_0 = arith.constant 0 : i32
    return %c0_i32 : i32
  }
  func.func @transform_4(%arg0: i32, %arg1: i32) -> i32 {
    %c0_i32 = arith.constant 0 : i32
    %c0_i32_0 = arith.constant 0 : i32
    return %c0_i32 : i32
  }
  func.func @transform_5(%arg0: i32, %arg1: i32) -> i32 {
    %c0_i32 = arith.constant 0 : i32
    %c0_i32_0 = arith.constant 0 : i32
    return %c0_i32 : i32
  }
  func.func @transform_6(%arg0: i32, %arg1: i32) -> i32 {
    %c0_i32 = arith.constant 0 : i32
    %c0_i32_0 = arith.constant 0 : i32
    return %c0_i32 : i32
  }
  func.func @transform_7(%arg0: i32, %arg1: i32) -> (i32, i32, i32) {
    %c0_i32 = arith.constant 0 : i32
    %c0_i32_0 = arith.constant 0 : i32
    return %arg0, %arg1, %c0_i32 : i32, i32, i32
  }
}

</mosaic_0001>

<bundles_post_ra>
// kernel: disp_forward.1
= control target key start
LH: loop header
LB: loop body
LE: loop exit
PB: predicated region body
PF: predicated region fallthrough
CT: control target
= control target key end

     0   :  { %s3719_s0 = inlined_call_operand.hbm [shape: f32[2,8,8,8], index: 0, kind: input, shape index: {}]   ;;  %s3720_s1 = inlined_call_operand.hbm [shape: f32[24,8], index: 1, kind: input, shape index: {}]   ;;  %s3721_s2 = inlined_call_operand.hbm [shape: f32[8,128], index: 2, kind: input, shape index: {}]   ;;  %s3722_s3 = inlined_call_operand.vmem [shape: s32[16], index: 3, kind: input, shape index: {}]   ;;  %s3723_s4 = inlined_call_operand.vmem [shape: s32[16], index: 4, kind: input, shape index: {}]   ;;  %s3724_s5 = inlined_call_operand.vmem [shape: f32[16], index: 5, kind: input, shape index: {}]   ;;  %s3725_s6 = inlined_call_operand.vmem [shape: f32[16], index: 6, kind: input, shape index: {}]   ;;  %s3726_s7 = inlined_call_operand.hbm [shape: f32[2,24,128], index: 7, kind: output, shape index: {}]  }
   0x1   :  { %3733 = sst [smem:[#allocation27_spill]] %s3719_s0 }
   0x2   :  { %3734 = sst [smem:[#allocation28_spill]] %s3720_s1 }
   0x3   :  { %3735 = sst [smem:[#allocation29_spill]] %s3721_s2 }
   0x4   :  { %3736 = sst [smem:[#allocation30_spill]] %s3722_s3 }
   0x5   :  { %3737 = sst [smem:[#allocation31_spill]] %s3723_s4 }
   0x6   :  { %3738 = sst [smem:[#allocation32_spill]] %s3724_s5 }
   0x7   :  { %3739 = sst [smem:[#allocation33_spill]] %s3725_s6 }
   0x8   :  { %12 = vsyncpa [#allocation7], 0 }
   0x9   :  { %14 = vsyncpa [#allocation7 + $0x1], 0 }
   0xa   :  { %15 = vsyncpa [#allocation11], 0 }
   0xb   :  { %16 = vsyncpa [#allocation9], 0 }
   0xc   :  { %17 = vsyncpa [#allocation15], 0 }
   0xd   :  { %18 = vsyncpa [#allocation18], 0 }
   0xe   :  { %19 = vsyncpa [#allocation8], 0 }
   0xf   :  { %21 = vsyncpa [#allocation8 + $0x1], 0  ;;  %s3153_s24 = smov 0   ;;  %s3155_s25 = smov 0  }
  0x10   :  { %s3157_s26 = smov 0   ;;  %s3159_s27 = smov 0  }
  0x11   :  { %s3161_s28 = smov 0   ;;  %s3163_s29 = smov 0  }
  0x12 LB: > { %s2347_s30 = sadd.s32 4294967295, %s3089_s29   ;;  %p2349_p0 = scmp.ge.s32.totalorder %s3089_s29, 1  ;;  %s3089_s29 = sphi %s3163_s29, %s27_s29   ;;  %s3085_s28 = sphi %s3161_s28, %s3768_s28   ;;  %s3081_s27 = sphi %s3159_s27, %s3767_s27   ;;  %s3077_s26 = sphi %s3157_s26, %s3766_s26   ;;  %s3073_s25 = sphi %s3155_s25, %s3765_s25   ;;  %s3069_s24 = sphi %s3153_s24, %s3764_s24  }
  0x13   : > { %p3187_p1 = scmp.eq.s32.totalorder %s2347_s30, 0  ;;  %p229_p2 = scmp.lt.s32.totalorder %s3089_s29, 3 }
  0x14   : > { %s3099_s10 = smov [#allocation10]   ;;  %s3742_s4 = sld [smem:[#allocation31_spill]] }
  0x15   : > { %s3740_s8 = scalar_select %p3187_p1, 1, 0 }
  0x16   : > { %p3192_p3 = pnand %p2349_p0, %p229_p2  ;;  %s244_s11 = sshll.u32 %s3099_s10, 4  ;;  %s245_s11 = int_to_ptr.vmem [resolvable:$true] %s244_s11 }
  0x17   : > { %s3100_s16 = smov [#allocation12]   ;;  %s2856_s19 = scalar_lea.vmem %s245_s11, 384 }
  0x18   : > { %s3741_s9 = scalar_select %p3192_p3, 1, 0 }
  0x19   : > { %p2698_p4 = pneg %p3192_p3  ;;  %s258_s17 = sshll.u32 %s3100_s16, 4  ;;  %s259_s17 = int_to_ptr.vmem [resolvable:$true] %s258_s17 }
  0x1a   : > { %s280_s14 = sshll.u32 %s3742_s4, 4  ;;  %p2857_p8 = scmp.ne.s32.totalorder %s245_s11, %s2856_s19  ;;  %s281_s14 = int_to_ptr.vmem [resolvable:$true] %s280_s14 }
  0x1b   : > { %p3204_p6 = pnand %p2698_p4, %p3187_p1  ;;  %p2864_p11 = scmp.lt.s32.totalorder %s245_s11, %s245_s11 }
  0x1c   : > { %p2865_p12 = scmp.lt.s32.totalorder %s2856_s19, %s2856_s19 }
  0x1d   : > { %p3210_p7 = pneg %p3204_p6 }
  0x1e   : > { %p2866_p13 = por %p2865_p12, %p2864_p11 }
  0x1f   : > { %p2859_p9 = pnand %p2857_p8, %p3210_p7 }
  0x21   : > { %p2860_p10 = pneg %p2859_p9 }
  0x23   : > { %p2867_p0 = pnand %p2866_p13, %p2860_p10 }
  0x25   : > { %2870 = shalt.err (!%p2867_p0)
}
  0x26   : > { %s3730_s20 = smov 128   ;;  %s3731_s21 = smov 8  }
  0x27   : > { %s3745_s1 = sld [smem:[#allocation28_spill]]  ;;  %s2871_s10 = scalar_lea.vmem %s281_s14, 16 }
  0x28   : > { %p2872_p2 = scmp.ne.s32.totalorder %s281_s14, %s2871_s10  ;;  %p2879_p9 = scmp.lt.s32.totalorder %s281_s14, %s281_s14 }
  0x29   : > { %p2880_p10 = scmp.lt.s32.totalorder %s2871_s10, %s2871_s10 }
  0x2a   : > { %p2874_p4 = pnand %p2872_p2, %p3210_p7 }
  0x2b   : > { %p2881_p11 = por %p2880_p10, %p2879_p9 }
  0x2c   : > { %p2875_p8 = pneg %p2874_p4 }
  0x2d   : > { %2701 = dma.hbm_to_vmem [thread:$0]  (!%p3204_p6), %s3745_s1, 384, %s245_s11, [#allocation11], %s3730_s20, %s3730_s20, %s3731_s21  }
  0x2e   : > { %p2882_p12 = pnand %p2881_p11, %p2875_p8 }
  0x30   : > { %2885 = shalt.err (!%p2882_p12)
}
  0x31   : > { %s3103_s12 = smov [#allocation14]   ;;  %s3746_s3 = sld [smem:[#allocation30_spill]] }
  0x32   : > { %2710 = dma.vmem_to_smem (!%p3204_p6), %s281_s14, 16, %s3103_s12, [#allocation15]  }
  0x33   : > { %s2897_s19 = scalar_lea.vmem %s259_s17, 128  ;;  %p2905_p4 = scmp.lt.s32.totalorder %s259_s17, %s259_s17 }
  0x34   : > { %p2898_p13 = scmp.ne.s32.totalorder %s259_s17, %s2897_s19  ;;  %p2906_p5 = scmp.lt.s32.totalorder %s2897_s19, %s2897_s19 }
  0x36   : > { %p2900_p0 = pnand %p2898_p13, %p3210_p7  ;;  %p2907_p9 = por %p2906_p5, %p2905_p4 }
  0x37   : > { %s269_s11 = sshll.u32 %s3746_s3, 4  ;;  %s270_s11 = int_to_ptr.vmem [resolvable:$true] %s269_s11 }
  0x38   : > { %p2901_p2 = pneg %p2900_p0 }
  0x3a   : > { %p2908_p8 = pnand %p2907_p9, %p2901_p2 }
  0x3c   : > { %2911 = shalt.err (!%p2908_p8)
}
  0x3d   : > { %s3747_s2 = sld [smem:[#allocation29_spill]]  ;;  %s2912_s14 = scalar_lea.vmem %s270_s11, 16 }
  0x3e   : > { %p2913_p10 = scmp.ne.s32.totalorder %s270_s11, %s2912_s14  ;;  %p2920_p13 = scmp.lt.s32.totalorder %s270_s11, %s270_s11 }
  0x3f   : > { %p2921_p0 = scmp.lt.s32.totalorder %s2912_s14, %s2912_s14 }
  0x40   : > { %p2915_p11 = pnand %p2913_p10, %p3210_p7 }
  0x41   : > { %p2922_p3 = por %p2921_p0, %p2920_p13 }
  0x42   : > { %p2916_p12 = pneg %p2915_p11 }
  0x43   : > { %2704 = dma.hbm_to_vmem [thread:$0]  (!%p3204_p6), %s3747_s2, 128, %s259_s17, [#allocation11]  }
  0x44   : > { %p2923_p1 = pnand %p2922_p3, %p2916_p12 }
  0x46   : > { %2926 = shalt.err (!%p2923_p1)
}
  0x47   : > { %s3104_s10 = smov [#allocation13]   ;;  %s3748_s5 = sld [smem:[#allocation32_spill]] }
  0x48   : > { %2707 = dma.vmem_to_smem (!%p3204_p6), %s270_s11, 16, %s3104_s10, [#allocation9]  }
  0x49   : > { %s3749_s6 = sld [smem:[#allocation33_spill]] }
  0x4d   : > { %s291_s17 = sshll.u32 %s3748_s5, 4  ;;  %s292_s17 = int_to_ptr.vmem [resolvable:$true] %s291_s17 }
  0x4e   : > { %s2927_s23 = scalar_lea.vmem %s292_s17, 16  ;;  %p2935_p1 = scmp.lt.s32.totalorder %s292_s17, %s292_s17 }
  0x4f   : > { %s302_s22 = sshll.u32 %s3749_s6, 4  ;;  %p2928_p5 = scmp.ne.s32.totalorder %s292_s17, %s2927_s23  ;;  %s303_s22 = int_to_ptr.vmem [resolvable:$true] %s302_s22 }
  0x50   : > { %p2936_p4 = scmp.lt.s32.totalorder %s2927_s23, %s2927_s23 }
  0x51   : > { %p2930_p2 = pnand %p2928_p5, %p3210_p7 }
  0x52   : > { %p2937_p9 = por %p2936_p4, %p2935_p1 }
  0x53   : > { %p2931_p3 = pneg %p2930_p2 }
  0x55   : > { %p2938_p8 = pnand %p2937_p9, %p2931_p3 }
  0x57   : > { %2941 = shalt.err (!%p2938_p8)
}
  0x58   : > { %s3105_s11 = smov [#allocation16]   ;;  %s2942_s14 = scalar_lea.vmem %s303_s22, 16 }
  0x59   : > { %2713 = dma.vmem_to_smem (!%p3204_p6), %s292_s17, 16, %s3105_s11, [#allocation15]  }
  0x5a   : > { %p2943_p10 = scmp.ne.s32.totalorder %s303_s22, %s2942_s14  ;;  %p2950_p13 = scmp.lt.s32.totalorder %s303_s22, %s303_s22 }
  0x5b   : > { %p2951_p0 = scmp.lt.s32.totalorder %s2942_s14, %s2942_s14 }
  0x5c   : > { %p2945_p11 = pnand %p2943_p10, %p3210_p7 }
  0x5d   : > { %p2952_p5 = por %p2951_p0, %p2950_p13 }
  0x5e   : > { %p2946_p12 = pneg %p2945_p11 }
  0x60   : > { %p2953_p2 = pnand %p2952_p5, %p2946_p12 }
  0x62   : > { %2956 = shalt.err (!%p2953_p2)
}
  0x63   : > { %s3106_s10 = smov [#allocation17]   ;;  %s2348_s18 = sadd.s32 4294967294, %s3089_s29  }
  0x64   : > { %2716 = dma.vmem_to_smem (!%p3204_p6), %s303_s22, 16, %s3106_s10, [#allocation18]  }
  0x65   : > { %s39_s12 = sadd.s32 1, %s3085_s28  ;;  %s46_s13 = sadd.s32 1, %s3077_s26 }
  0x66   : > { %p41_p7 = scmp.ge.s32.totalorder %s39_s12, 2  ;;  %p53_p3 = scmp.ne.s32.totalorder %s3077_s26, %s3073_s25 }
  0x67   : > { %p54_p1 = scmp.eq.s32.totalorder %s3089_s29, 0  ;;  %p59_p9 = scmp.ne.s32.totalorder %s3073_s25, %s3069_s24 }
  0x68   : > { %s3770_s12 = smov (%p41_p7, %s39_s12), 0  ;;  %p216_p6 = scmp.eq.s32.totalorder %s2347_s30, 1 }
  0x69   : > { %3750 = sst [smem:[#allocation26_spill]] %s3770_s12  ;;  %p3264_p4 = por %p54_p1, %p53_p3 }
  0x6a   : > { %s43_s17 = ssub.s32 %s3085_s28, %s3770_s12  ;;  %p3752_p10 = scmp.ne.s32.totalorder %s3740_s8, 0 }
  0x6b   : > { %p44_p8 = scmp.eq.s32.totalorder %s43_s17, 0  ;;  %p3280_p12 = por %p216_p6, %p53_p3 }
  0x6c   : > { %p3276_p11 = por %p3752_p10, %p59_p9  ;;  %p222_p13 = scmp.eq.s32.totalorder %s2348_s18, 1 }
  0x6d   : > { %s3285_s22 = scalar_select %p44_p8, %s3077_s26, %s46_s13  }
  0x6e   : > { %p3287_p0 = por %p222_p13, %p59_p9  ;;  %p2731_p5 = scmp.lt.s32.totalorder %s3089_s29, 2 }
  0x6f   : > { %s313_s11 = sand.u32 1, %s3077_s26   ;;  %s2427_s30 = sshll.u32 %s3085_s28, 10 }
  0x70   : > { %s2357_s14 = sshll.u32 %s313_s11, 6  ;;  %s3756_s0 = sld [smem:[#allocation27_spill]] }
  0x71   : > { %s317_s21 = scalar_lea.vmem [#allocation6], %s2357_s14  ;;  %p3299_p2 = pnand %p2731_p5, %p3264_p4 }
  0x72   : > { %s324_s1 = sshll.u32 %s317_s21, 4  ;;  %s314_s18 = scalar_lea.sflag [#allocation7], %s313_s11  ;;  %s325_s1 = int_to_ptr.vmem [resolvable:$true] %s324_s1 }
  0x73   : > { %p2959_p7 = pneg %p3299_p2  ;;  %s2970_s13 = scalar_lea.vmem %s325_s1, 1024 }
  0x74   : > { %p2971_p3 = scmp.ne.s32.totalorder %s325_s1, %s2970_s13  ;;  %s3107_s3 = smov [#allocation6]  }
  0x75   : > { %s2975_s4 = sshll.u32 %s3107_s3, 4  ;;  %s2976_s4 = int_to_ptr.vmem [resolvable:$false] %s2975_s4 }
  0x76   : > { %s323_s20 = scalar_lea.hbm %s3756_s0, %s2427_s30  ;;  %p2973_p1 = pnand %p2971_p3, %p2959_p7 }
  0x77   : > { %s2977_s30 = scalar_lea.vmem %s2976_s4, 2048  ;;  %p2978_p6 = scmp.lt.s32.totalorder %s325_s1, %s2976_s4 }
  0x78   : > { %p2974_p9 = pneg %p2973_p1  ;;  %p2979_p8 = scmp.lt.s32.totalorder %s2977_s30, %s2970_s13 }
  0x7a   : > { %p2980_p10 = por %p2979_p8, %p2978_p6 }
  0x7c   : > { %p2981_p4 = pnand %p2980_p10, %p2974_p9 }
  0x7e   : > { %2984 = shalt.err (!%p2981_p4)
}
  0x7f   : > { %s3758_s21 = smov 8   ;;  %s3759_s15 = smov 128  }
  0x80   : > { %2720 = dma.hbm_to_vmem [thread:$0]  (!%p3299_p2), %s323_s20, 1024, %s325_s1, %s314_s18, %s3759_s15, %s3759_s15, %s3758_s21  }
  0x81   : > { %p3760_p13 = scmp.ne.s32.totalorder %s3741_s9, 0 }
  0x82   : > { %s3313_s11 = sand.u32 (!%p3760_p13), 1, %s3073_s25  }
  0x83   : > { %336 = sbr.rel (%p3760_p13) target bundleno = 759 (0x2f7), region = 48  ;;  %s2361_s3 = sshll.u32 (!%p3760_p13), %s3313_s11, 6 }
  0x84   : > { %s339_s4 = scalar_lea.sflag (!%p3760_p13), [#allocation7], %s3313_s11  ;;  %s3317_s14 = scalar_lea.vmem (!%p3760_p13), [#allocation6], %s2361_s3 }
  0x88   : > { %3044 = dma.done.wait (%p3276_p11), %s339_s4, 1024  }
  0x89   : > { %3046 = vsyncadd (%p3276_p11), %s339_s4, 4294966272  ;;  %p3761_p5 = scmp.ne.s32.totalorder %s3740_s8, 0 }
  0x8b   : > { %3048 = dma.done.wait (%p3761_p5), [#allocation11], 512  }
  0x8c   : > { %3050 = vsyncadd (%p3761_p5), [#allocation11], 4294966784 }
  0x8d   : > { %3052 = dma.done.wait (%p3761_p5), [#allocation9], 16  }
  0x8e   : > { %3054 = vsyncadd (%p3761_p5), [#allocation9], 4294967280 }
  0x8f   : > { %3056 = dma.done.wait (%p3761_p5), [#allocation15], 32  }
  0x90   : > { %3058 = vsyncadd (%p3761_p5), [#allocation15], 4294967264 }
  0x91   : > { %3060 = dma.done.wait (%p3761_p5), [#allocation18], 16  }
  0x92   : > { %3062 = vsyncadd (%p3761_p5), [#allocation18], 4294967280 }
  0x93   : > { %371 = sfence }
  0x94   : > { %s2668_s1 = smul.u32 24, %s3313_s11  ;;  %v404_v0 = vld [vmem:[%s3317_s14] sm:$0xff]  ;;  %vm405_vm0 = vcmask 64512   ;;  %v3108_v2 = vmov 0.0   ;;  %vm3109_vm1 = vmmov 0   ;;  %v2374_v3 = vld [vmem:[%s3317_s14 + $0x8] sm:$0xff] }
  0x95   : > { %v3341_v1 = vld [vmem:[#allocation10] sm:$0xff]  ;;  %2492 = vmatprep.subr.mxu0 %v3108_v2  ;;  %2494 = vmatprep.mubr.msk.f32.mxu0 %vm3109_vm1, %v3108_v2  ;;  %v3353_v4 = vld [vmem:[#allocation10 + $0x8] sm:$0xff]  ;;  %v3362_v5 = vld [vmem:[#allocation10 + $0x10] sm:$0xff]  ;;  %s1812_s2 = sld [smem:[#allocation13]]  ;;  %s3552_s30 = smov 1  }
  0x96   : > { %2493 = vmatpush3.msra.mxu0 %v404_v0  ;;  %2503 = vmatprep.subr.mxu1 %v3108_v2  ;;  %v2381_v6 = vld [vmem:[%s3317_s14 + $0x10] sm:$0xff]  ;;  %v2388_v7 = vld [vmem:[%s3317_s14 + $0x18] sm:$0xff]  ;;  %v2395_v8 = vld [vmem:[%s3317_s14 + $0x20] sm:$0xff]  ;;  %s1818_s8 = sld [smem:[#allocation14]]  ;;  %s3550_s13 = scalar_lea.vmem [#allocation19], %s2668_s1 }
  0x97   : > { %2495 = vmatmul.mubr.msk.f32.vlgmr.msra.gmra.mxu0 %vm405_vm0, %v3341_v1  ;;  %2514 = vmatprep.subr.mxu0 %v3108_v2  ;;  %v2402_v9 = vld [vmem:[%s3317_s14 + $0x28] sm:$0xff]  ;;  %v2409_v10 = vld [vmem:[%s3317_s14 + $0x30] sm:$0xff]  ;;  %v3430_v11 = vld [vmem:[#allocation12] sm:$0xff]  ;;  %s1824_s9 = sld [smem:[#allocation16]] }
  0x98   : > { %2515 = vmatpush3.msra.mxu0 %v2374_v3  ;;  %2497 = vmatprep.mubr.msk.f32.mxu0 %vm3109_vm1, %v3108_v2  ;;  %v2416_v12 = vld [vmem:[%s3317_s14 + $0x38] sm:$0xff]  ;;  %s1829_s20 = sld [smem:[#allocation17]] }
  0x99   : > { %2536 = vmatprep.subr.mxu0 %v3108_v2  ;;  %2505 = vmatprep.mubr.msk.f32.mxu1 %vm3109_vm1, %v3108_v2 }
  0x9a   : > { %2504 = vmatpush3.msra.mxu1 %v3430_v11 }
  0x9b   : > { %2498 = vmatmul.mubr.msk.f32.gmra.mxu0 %vm405_vm0, %v3353_v4  ;;  %2525 = vmatprep.subr.mxu1 %v3108_v2  ;;  %s1813_s16 = smul.u32 24, %s1812_s2 }
  0x9c   : > { %2500 = vmatprep.mubr.msk.f32.mxu0 %vm3109_vm1, %v3108_v2  ;;  %s1819_s10 = smul.u32 24, %s1818_s8 }
  0x9d   : > { %s1814_s17 = scalar_lea.vmem [#allocation2], %s1813_s16 }
  0x9e   : > { %s1820_s18 = scalar_lea.vmem [#allocation2], %s1819_s10 }
  0x9f   : > { %2501 = vmatmul.mubr.msk.f32.gmra.mxu0 %vm405_vm0, %v3362_v5 }
  0xa0   : > { %2516 = vmatprep.mubr.msk.f32.mxu0 %vm3109_vm1, %v3108_v2 }
  0xa3   : > { %2517 = vmatmul.mubr.msk.f32.vlgmr.msra.gmra.mxu0 %vm405_vm0, %v3341_v1 }
  0xa4   : > { %2537 = vmatpush3.msra.mxu0 %v2381_v6  ;;  %2519 = vmatprep.mubr.msk.f32.mxu0 %vm3109_vm1, %v3108_v2 }
  0xa5   : > { %2558 = vmatprep.subr.mxu0 %v3108_v2 }
  0xa7   : > { %2520 = vmatmul.mubr.msk.f32.gmra.mxu0 %vm405_vm0, %v3353_v4 }
  0xa8   : > { %2522 = vmatprep.mubr.msk.f32.mxu0 %vm3109_vm1, %v3108_v2 }
  0xab   : > { %2523 = vmatmul.mubr.msk.f32.gmra.mxu0 %vm405_vm0, %v3362_v5 }
  0xac   : > { %2538 = vmatprep.mubr.msk.f32.mxu0 %vm3109_vm1, %v3108_v2 }
  0xaf   : > { %2539 = vmatmul.mubr.msk.f32.vlgmr.msra.gmra.mxu0 %vm405_vm0, %v3341_v1 }
  0xb0   : > { %2559 = vmatpush3.msra.mxu0 %v2388_v7  ;;  %2541 = vmatprep.mubr.msk.f32.mxu0 %vm3109_vm1, %v3108_v2 }
  0xb1   : > { %2580 = vmatprep.subr.mxu0 %v3108_v2 }
  0xb3   : > { %2542 = vmatmul.mubr.msk.f32.gmra.mxu0 %vm405_vm0, %v3353_v4 }
  0xb4   : > { %2544 = vmatprep.mubr.msk.f32.mxu0 %vm3109_vm1, %v3108_v2 }
  0xb7   : > { %2545 = vmatmul.mubr.msk.f32.gmra.mxu0 %vm405_vm0, %v3362_v5 }
  0xb8   : > { %2560 = vmatprep.mubr.msk.f32.mxu0 %vm3109_vm1, %v3108_v2 }
  0xbb   : > { %2561 = vmatmul.mubr.msk.f32.vlgmr.msra.gmra.mxu0 %vm405_vm0, %v3341_v1 }
  0xbc   : > { %2581 = vmatpush3.msra.mxu0 %v2395_v8  ;;  %2563 = vmatprep.mubr.msk.f32.mxu0 %vm3109_vm1, %v3108_v2 }
  0xbd   : > { %2602 = vmatprep.subr.mxu0 %v3108_v2 }
  0xbf   : > { %2564 = vmatmul.mubr.msk.f32.gmra.mxu0 %vm405_vm0, %v3353_v4 }
  0xc0   : > { %2566 = vmatprep.mubr.msk.f32.mxu0 %vm3109_vm1, %v3108_v2 }
  0xc3   : > { %2567 = vmatmul.mubr.msk.f32.gmra.mxu0 %vm405_vm0, %v3362_v5 }
  0xc4   : > { %2582 = vmatprep.mubr.msk.f32.mxu0 %vm3109_vm1, %v3108_v2 }
  0xc7   : > { %2583 = vmatmul.mubr.msk.f32.vlgmr.msra.gmra.mxu0 %vm405_vm0, %v3341_v1 }
  0xc8   : > { %2603 = vmatpush3.msra.mxu0 %v2402_v9  ;;  %2585 = vmatprep.mubr.msk.f32.mxu0 %vm3109_vm1, %v3108_v2 }
  0xc9   : > { %2624 = vmatprep.subr.mxu0 %v3108_v2 }
  0xcb   : > { %2586 = vmatmul.mubr.msk.f32.gmra.mxu0 %vm405_vm0, %v3353_v4 }
  0xcc   : > { %2588 = vmatprep.mubr.msk.f32.mxu0 %vm3109_vm1, %v3108_v2 }
  0xcf   : > { %2589 = vmatmul.mubr.msk.f32.gmra.mxu0 %vm405_vm0, %v3362_v5 }
  0xd0   : > { %2604 = vmatprep.mubr.msk.f32.mxu0 %vm3109_vm1, %v3108_v2 }
  0xd3   : > { %2605 = vmatmul.mubr.msk.f32.vlgmr.msra.gmra.mxu0 %vm405_vm0, %v3341_v1 }
  0xd4   : > { %2625 = vmatpush3.msra.mxu0 %v2409_v10  ;;  %2607 = vmatprep.mubr.msk.f32.mxu0 %vm3109_vm1, %v3108_v2 }
  0xd5   : > { %2646 = vmatprep.subr.mxu0 %v3108_v2 }
  0xd7   : > { %2608 = vmatmul.mubr.msk.f32.gmra.mxu0 %vm405_vm0, %v3353_v4 }
  0xd8   : > { %2610 = vmatprep.mubr.msk.f32.mxu0 %vm3109_vm1, %v3108_v2 }
  0xdb   : > { %2611 = vmatmul.mubr.msk.f32.gmra.mxu0 %vm405_vm0, %v3362_v5 }
  0xdc   : > { %2626 = vmatprep.mubr.msk.f32.mxu0 %vm3109_vm1, %v3108_v2 }
  0xdf   : > { %2627 = vmatmul.mubr.msk.f32.vlgmr.msra.gmra.mxu0 %vm405_vm0, %v3341_v1 }
  0xe0   : > { %2647 = vmatpush3.msra.mxu0 %v2416_v12  ;;  %2629 = vmatprep.mubr.msk.f32.mxu0 %vm3109_vm1, %v3108_v2 }
  0xe3   : > { %2630 = vmatmul.mubr.msk.f32.gmra.mxu0 %vm405_vm0, %v3353_v4 }
  0xe4   : > { %2632 = vmatprep.mubr.msk.f32.mxu0 %vm3109_vm1, %v3108_v2 }
  0xe7   : > { %2633 = vmatmul.mubr.msk.f32.gmra.mxu0 %vm405_vm0, %v3362_v5 }
  0xe8   : > { %2648 = vmatprep.mubr.msk.f32.mxu0 %vm3109_vm1, %v3108_v2 }
  0xeb   : > { %2649 = vmatmul.mubr.msk.f32.vlgmr.msra.gmra.mxu0 %vm405_vm0, %v3341_v1 }
  0xec   : > { %2651 = vmatprep.mubr.msk.f32.mxu0 %vm3109_vm1, %v3108_v2 }
  0xef   : > { %2652 = vmatmul.mubr.msk.f32.gmra.mxu0 %vm405_vm0, %v3353_v4 }
  0xf0   : > { %2654 = vmatprep.mubr.msk.f32.mxu0 %vm3109_vm1, %v3108_v2 }
  0xf3   : > { %2655 = vmatmul.mubr.msk.f32.gmra.mxu0 %vm405_vm0, %v3362_v5 }
 0x157   : > { %v481_v13 = vpop.f32.mrf.mxu0 }
 0x158   : > { %2506 = vmatmul.mubr.msk.f32.vlgmr.msra.gmra.mxu1 %vm405_vm0, %v481_v13 }
 0x159   : > { %v2496_v14 = vpop.f32.mrf.mxu0  ;;  %2526 = vmatpush3.msra.mxu1 %v3430_v11  ;;  %2508 = vmatprep.mubr.msk.f32.mxu1 %vm3109_vm1, %v3108_v2 }
 0x15a   : > { %2547 = vmatprep.subr.mxu1 %v3108_v2 }
 0x15b   : > { %v486_v15 = vpop.f32.mrf.mxu0 }
 0x15c   : > { %2509 = vmatmul.mubr.msk.f32.gmra.mxu1 %vm405_vm0, %v486_v15 }
 0x15d   : > { %v2499_v16 = vpop.f32.mrf.mxu0  ;;  %2511 = vmatprep.mubr.msk.f32.mxu1 %vm3109_vm1, %v3108_v2 }
 0x15f   : > { %v491_v17 = vpop.f32.mrf.mxu0 }
 0x160   : > { %2512 = vmatmul.mubr.msk.f32.gmra.mxu1 %vm405_vm0, %v491_v17 }
 0x161   : > { %v2502_v18 = vpop.f32.mrf.mxu0  ;;  %2527 = vmatprep.mubr.msk.f32.mxu1 %vm3109_vm1, %v3108_v2 }
 0x163   : > { %v655_v19 = vpop.f32.mrf.mxu0 }
 0x164   : > { %2528 = vmatmul.mubr.msk.f32.vlgmr.msra.gmra.mxu1 %vm405_vm0, %v655_v19 }
 0x165   : > { %v2518_v20 = vpop.f32.mrf.mxu0  ;;  %2548 = vmatpush3.msra.mxu1 %v3430_v11  ;;  %2530 = vmatprep.mubr.msk.f32.mxu1 %vm3109_vm1, %v3108_v2 }
 0x166   : > { %2569 = vmatprep.subr.mxu1 %v3108_v2 }
 0x167   : > { %v660_v21 = vpop.f32.mrf.mxu0 }
 0x168   : > { %2531 = vmatmul.mubr.msk.f32.gmra.mxu1 %vm405_vm0, %v660_v21 }
 0x169   : > { %v2521_v22 = vpop.f32.mrf.mxu0  ;;  %2533 = vmatprep.mubr.msk.f32.mxu1 %vm3109_vm1, %v3108_v2 }
 0x16b   : > { %v665_v23 = vpop.f32.mrf.mxu0 }
 0x16c   : > { %2534 = vmatmul.mubr.msk.f32.gmra.mxu1 %vm405_vm0, %v665_v23 }
 0x16d   : > { %v2524_v24 = vpop.f32.mrf.mxu0  ;;  %2549 = vmatprep.mubr.msk.f32.mxu1 %vm3109_vm1, %v3108_v2 }
 0x16f   : > { %v830_v25 = vpop.f32.mrf.mxu0 }
 0x170   : > { %2550 = vmatmul.mubr.msk.f32.vlgmr.msra.gmra.mxu1 %vm405_vm0, %v830_v25 }
 0x171   : > { %v2540_v26 = vpop.f32.mrf.mxu0  ;;  %2570 = vmatpush3.msra.mxu1 %v3430_v11  ;;  %2552 = vmatprep.mubr.msk.f32.mxu1 %vm3109_vm1, %v3108_v2 }
 0x172   : > { %2591 = vmatprep.subr.mxu1 %v3108_v2 }
 0x173   : > { %v835_v27 = vpop.f32.mrf.mxu0 }
 0x174   : > { %2553 = vmatmul.mubr.msk.f32.gmra.mxu1 %vm405_vm0, %v835_v27 }
 0x175   : > { %v2543_v28 = vpop.f32.mrf.mxu0  ;;  %2555 = vmatprep.mubr.msk.f32.mxu1 %vm3109_vm1, %v3108_v2 }
 0x177   : > { %v840_v29 = vpop.f32.mrf.mxu0 }
 0x178   : > { %2556 = vmatmul.mubr.msk.f32.gmra.mxu1 %vm405_vm0, %v840_v29 }
 0x179   : > { %v2546_v30 = vpop.f32.mrf.mxu0  ;;  %2571 = vmatprep.mubr.msk.f32.mxu1 %vm3109_vm1, %v3108_v2 }
 0x17b   : > { %v1005_v31 = vpop.f32.mrf.mxu0 }
 0x17c   : > { %2572 = vmatmul.mubr.msk.f32.vlgmr.msra.gmra.mxu1 %vm405_vm0, %v1005_v31 }
 0x17d   : > { %v2562_v32 = vpop.f32.mrf.mxu0  ;;  %2592 = vmatpush3.msra.mxu1 %v3430_v11  ;;  %2574 = vmatprep.mubr.msk.f32.mxu1 %vm3109_vm1, %v3108_v2 }
 0x17e   : > { %2613 = vmatprep.subr.mxu1 %v3108_v2 }
 0x17f   : > { %v1010_v33 = vpop.f32.mrf.mxu0 }
 0x180   : > { %2575 = vmatmul.mubr.msk.f32.gmra.mxu1 %vm405_vm0, %v1010_v33 }
 0x181   : > { %v2565_v34 = vpop.f32.mrf.mxu0  ;;  %2577 = vmatprep.mubr.msk.f32.mxu1 %vm3109_vm1, %v3108_v2 }
 0x183   : > { %v1015_v35 = vpop.f32.mrf.mxu0 }
 0x184   : > { %2578 = vmatmul.mubr.msk.f32.gmra.mxu1 %vm405_vm0, %v1015_v35 }
 0x185   : > { %v2568_v36 = vpop.f32.mrf.mxu0  ;;  %2593 = vmatprep.mubr.msk.f32.mxu1 %vm3109_vm1, %v3108_v2 }
 0x187   : > { %v1180_v37 = vpop.f32.mrf.mxu0 }
 0x188   : > { %2594 = vmatmul.mubr.msk.f32.vlgmr.msra.gmra.mxu1 %vm405_vm0, %v1180_v37 }
 0x189   : > { %v2584_v38 = vpop.f32.mrf.mxu0  ;;  %2614 = vmatpush3.msra.mxu1 %v3430_v11  ;;  %2596 = vmatprep.mubr.msk.f32.mxu1 %vm3109_vm1, %v3108_v2 }
 0x18a   : > { %2635 = vmatprep.subr.mxu1 %v3108_v2 }
 0x18b   : > { %v1185_v39 = vpop.f32.mrf.mxu0 }
 0x18c   : > { %2597 = vmatmul.mubr.msk.f32.gmra.mxu1 %vm405_vm0, %v1185_v39 }
 0x18d   : > { %v2587_v40 = vpop.f32.mrf.mxu0  ;;  %2599 = vmatprep.mubr.msk.f32.mxu1 %vm3109_vm1, %v3108_v2 }
 0x18f   : > { %v1190_v41 = vpop.f32.mrf.mxu0 }
 0x190   : > { %2600 = vmatmul.mubr.msk.f32.gmra.mxu1 %vm405_vm0, %v1190_v41 }
 0x191   : > { %v2590_v42 = vpop.f32.mrf.mxu0  ;;  %2615 = vmatprep.mubr.msk.f32.mxu1 %vm3109_vm1, %v3108_v2 }
 0x193   : > { %v1355_v43 = vpop.f32.mrf.mxu0 }
 0x194   : > { %2616 = vmatmul.mubr.msk.f32.vlgmr.msra.gmra.mxu1 %vm405_vm0, %v1355_v43 }
 0x195   : > { %v2606_v44 = vpop.f32.mrf.mxu0  ;;  %2636 = vmatpush3.msra.mxu1 %v3430_v11  ;;  %2618 = vmatprep.mubr.msk.f32.mxu1 %vm3109_vm1, %v3108_v2 }
 0x196   : > { %2657 = vmatprep.subr.mxu1 %v3108_v2 }
 0x197   : > { %v1360_v45 = vpop.f32.mrf.mxu0 }
 0x198   : > { %2619 = vmatmul.mubr.msk.f32.gmra.mxu1 %vm405_vm0, %v1360_v45 }
 0x199   : > { %v2609_v46 = vpop.f32.mrf.mxu0  ;;  %2621 = vmatprep.mubr.msk.f32.mxu1 %vm3109_vm1, %v3108_v2 }
 0x19a   : > { %v1825_v46 = vstv %s1824_s9 }
 0x19b   : > { %v1365_v47 = vpop.f32.mrf.mxu0 }
 0x19c   : > { %2622 = vmatmul.mubr.msk.f32.gmra.mxu1 %vm405_vm0, %v1365_v47  ;;  %v1830_v47 = vstv %s1829_s20 }
 0x19d   : > { %v2612_v48 = vpop.f32.mrf.mxu0  ;;  %2637 = vmatprep.mubr.msk.f32.mxu1 %vm3109_vm1, %v3108_v2 }
 0x19f   : > { %v1530_v49 = vpop.f32.mrf.mxu0 }
 0x1a0   : > { %2638 = vmatmul.mubr.msk.f32.vlgmr.msra.gmra.mxu1 %vm405_vm0, %v1530_v49 }
 0x1a1   : > { %v2628_v50 = vpop.f32.mrf.mxu0  ;;  %2658 = vmatpush3.msra.mxu1 %v3430_v11  ;;  %2640 = vmatprep.mubr.msk.f32.mxu1 %vm3109_vm1, %v3108_v2 }
 0x1a3   : > { %v1535_v51 = vpop.f32.mrf.mxu0 }
 0x1a4   : > { %2641 = vmatmul.mubr.msk.f32.gmra.mxu1 %vm405_vm0, %v1535_v51 }
 0x1a5   : > { %v2631_v52 = vpop.f32.mrf.mxu0  ;;  %2643 = vmatprep.mubr.msk.f32.mxu1 %vm3109_vm1, %v3108_v2 }
 0x1a7   : > { %v1540_v53 = vpop.f32.mrf.mxu0 }
 0x1a8   : > { %2644 = vmatmul.mubr.msk.f32.gmra.mxu1 %vm405_vm0, %v1540_v53 }
 0x1a9   : > { %v2634_v54 = vpop.f32.mrf.mxu0  ;;  %2659 = vmatprep.mubr.msk.f32.mxu1 %vm3109_vm1, %v3108_v2 }
 0x1ab   : > { %v1705_v55 = vpop.f32.mrf.mxu0 }
 0x1ac   : > { %2660 = vmatmul.mubr.msk.f32.vlgmr.msra.gmra.mxu1 %vm405_vm0, %v1705_v55 }
 0x1ad   : > { %v2650_v56 = vpop.f32.mrf.mxu0  ;;  %2662 = vmatprep.mubr.msk.f32.mxu1 %vm3109_vm1, %v3108_v2 }
 0x1af   : > { %v1710_v57 = vpop.f32.mrf.mxu0 }
 0x1b0   : > { %2663 = vmatmul.mubr.msk.f32.gmra.mxu1 %vm405_vm0, %v1710_v57 }
 0x1b1   : > { %v2653_v58 = vpop.f32.mrf.mxu0  ;;  %2665 = vmatprep.mubr.msk.f32.mxu1 %vm3109_vm1, %v3108_v2 }
 0x1b3   : > { %v1715_v59 = vpop.f32.mrf.mxu0 }
 0x1b4   : > { %2666 = vmatmul.mubr.msk.f32.gmra.mxu1 %vm405_vm0, %v1715_v59 }
 0x1b5   : > { %v2656_v60 = vpop.f32.mrf.mxu0 }
 0x218   : > { %v570_v61 = vpop.f32.mrf.mxu1 }
 0x219   : > { %584 = vst [vmem:[#allocation2] sm:$0xff] %v570_v61 }
 0x21a   : > { %v2507_v62 = vpop.f32.mrf.mxu1 }
 0x21c   : > { %v575_v63 = vpop.f32.mrf.mxu1 }
 0x21d   : > { %585 = vst [vmem:[#allocation2 + $0x8] sm:$0xff] %v575_v63 }
 0x21e   : > { %v2510_v0 = vpop.f32.mrf.mxu1 }
 0x220   : > { %v580_v1 = vpop.f32.mrf.mxu1 }
 0x221   : > { %586 = vst [vmem:[#allocation2 + $0x10] sm:$0xff] %v580_v1 }
 0x222   : > { %v2513_v3 = vpop.f32.mrf.mxu1 }
 0x224   : > { %v744_v4 = vpop.f32.mrf.mxu1 }
 0x225   : > { %759 = vst [vmem:[#allocation2 + $0x18] sm:$0xff] %v744_v4 }
 0x226   : > { %v2529_v5 = vpop.f32.mrf.mxu1 }
 0x228   : > { %v749_v6 = vpop.f32.mrf.mxu1 }
 0x229   : > { %760 = vst [vmem:[#allocation2 + $0x20] sm:$0xff] %v749_v6 }
 0x22a   : > { %v2532_v7 = vpop.f32.mrf.mxu1 }
 0x22c   : > { %v754_v8 = vpop.f32.mrf.mxu1 }
 0x22d   : > { %761 = vst [vmem:[#allocation2 + $0x28] sm:$0xff] %v754_v8 }
 0x22e   : > { %v2535_v9 = vpop.f32.mrf.mxu1 }
 0x230   : > { %v919_v10 = vpop.f32.mrf.mxu1 }
 0x231   : > { %934 = vst [vmem:[#allocation2 + $0x30] sm:$0xff] %v919_v10 }
 0x232   : > { %v2551_v11 = vpop.f32.mrf.mxu1 }
 0x234   : > { %v924_v12 = vpop.f32.mrf.mxu1 }
 0x235   : > { %935 = vst [vmem:[#allocation2 + $0x38] sm:$0xff] %v924_v12 }
 0x236   : > { %v2554_v13 = vpop.f32.mrf.mxu1 }
 0x238   : > { %v929_v14 = vpop.f32.mrf.mxu1 }
 0x239   : > { %936 = vst [vmem:[#allocation2 + $0x40] sm:$0xff] %v929_v14 }
 0x23a   : > { %v2557_v15 = vpop.f32.mrf.mxu1 }
 0x23c   : > { %v1094_v16 = vpop.f32.mrf.mxu1 }
 0x23d   : > { %1109 = vst [vmem:[#allocation2 + $0x48] sm:$0xff] %v1094_v16 }
 0x23e   : > { %v2573_v17 = vpop.f32.mrf.mxu1 }
 0x240   : > { %v1099_v18 = vpop.f32.mrf.mxu1 }
 0x241   : > { %1110 = vst [vmem:[#allocation2 + $0x50] sm:$0xff] %v1099_v18 }
 0x242   : > { %v2576_v19 = vpop.f32.mrf.mxu1 }
 0x244   : > { %v1104_v20 = vpop.f32.mrf.mxu1 }
 0x245   : > { %1111 = vst [vmem:[#allocation2 + $0x58] sm:$0xff] %v1104_v20 }
 0x246   : > { %v2579_v21 = vpop.f32.mrf.mxu1 }
 0x248   : > { %v1269_v22 = vpop.f32.mrf.mxu1 }
 0x249   : > { %1284 = vst [vmem:[#allocation2 + $0x60] sm:$0xff] %v1269_v22 }
 0x24a   : > { %v2595_v23 = vpop.f32.mrf.mxu1 }
 0x24c   : > { %v1274_v24 = vpop.f32.mrf.mxu1 }
 0x24d   : > { %1285 = vst [vmem:[#allocation2 + $0x68] sm:$0xff] %v1274_v24 }
 0x24e   : > { %v2598_v25 = vpop.f32.mrf.mxu1 }
 0x250   : > { %v1279_v26 = vpop.f32.mrf.mxu1 }
 0x251   : > { %1286 = vst [vmem:[#allocation2 + $0x70] sm:$0xff] %v1279_v26 }
 0x252   : > { %v2601_v27 = vpop.f32.mrf.mxu1 }
 0x254   : > { %v1444_v28 = vpop.f32.mrf.mxu1 }
 0x255   : > { %1459 = vst [vmem:[#allocation2 + $0x78] sm:$0xff] %v1444_v28 }
 0x256   : > { %v2617_v29 = vpop.f32.mrf.mxu1 }
 0x258   : > { %v1449_v30 = vpop.f32.mrf.mxu1 }
 0x259   : > { %1460 = vst [vmem:[#allocation2 + $0x80] sm:$0xff] %v1449_v30 }
 0x25a   : > { %v2620_v31 = vpop.f32.mrf.mxu1 }
 0x25c   : > { %v1454_v32 = vpop.f32.mrf.mxu1 }
 0x25d   : > { %1461 = vst [vmem:[#allocation2 + $0x88] sm:$0xff] %v1454_v32 }
 0x25e   : > { %v2623_v33 = vpop.f32.mrf.mxu1 }
 0x260   : > { %v1619_v34 = vpop.f32.mrf.mxu1 }
 0x261   : > { %1634 = vst [vmem:[#allocation2 + $0x90] sm:$0xff] %v1619_v34 }
 0x262   : > { %v2639_v35 = vpop.f32.mrf.mxu1 }
 0x264   : > { %v1624_v36 = vpop.f32.mrf.mxu1 }
 0x265   : > { %1635 = vst [vmem:[#allocation2 + $0x98] sm:$0xff] %v1624_v36 }
 0x266   : > { %v2642_v37 = vpop.f32.mrf.mxu1 }
 0x268   : > { %v1629_v38 = vpop.f32.mrf.mxu1 }
 0x269   : > { %1636 = vst [vmem:[#allocation2 + $0xa0] sm:$0xff] %v1629_v38 }
 0x26a   : > { %v2645_v39 = vpop.f32.mrf.mxu1 }
 0x26c   : > { %v1794_v40 = vpop.f32.mrf.mxu1 }
 0x26d   : > { %1809 = vst [vmem:[#allocation2 + $0xa8] sm:$0xff] %v1794_v40 }
 0x26e   : > { %v2661_v41 = vpop.f32.mrf.mxu1 }
 0x270   : > { %v1799_v42 = vpop.f32.mrf.mxu1 }
 0x271   : > { %1810 = vst [vmem:[#allocation2 + $0xb0] sm:$0xff] %v1799_v42 }
 0x272   : > { %v2664_v43 = vpop.f32.mrf.mxu1 }
 0x274   : > { %v1804_v44 = vpop.f32.mrf.mxu1 }
 0x275   : > { %1811 = vst [vmem:[#allocation2 + $0xb8] sm:$0xff] %v1804_v44 }
 0x276   : > { %v2667_v45 = vpop.f32.mrf.mxu1 }
 0x27c   : > { %v1815_v48 = vld [vmem:[%s1814_s17] sm:$0xff]  ;;  %v1816_v49 = vld [vmem:[%s1814_s17 + $0x8] sm:$0xff]  ;;  %v1817_v50 = vld [vmem:[%s1814_s17 + $0x10] sm:$0xff] }
 0x27d   : > { %v1821_v51 = vld [vmem:[%s1820_s18] sm:$0xff]  ;;  %v1822_v52 = vld [vmem:[%s1820_s18 + $0x8] sm:$0xff]  ;;  %v1823_v53 = vld [vmem:[%s1820_s18 + $0x10] sm:$0xff]  ;;  %v1826_v54 = vmul.f32 %v1825_v46, %v1815_v48  ;;  %v1827_v55 = vmul.f32 %v1825_v46, %v1816_v49  ;;  %v1828_v56 = vmul.f32 %v1825_v46, %v1817_v50 }
 0x27e   : > { %v1831_v57 = vmul.f32 %v1830_v47, %v1821_v51  ;;  %v1832_v58 = vmul.f32 %v1830_v47, %v1822_v52  ;;  %v1833_v59 = vmul.f32 %v1830_v47, %v1823_v53 }
 0x280   : > { %v1834_v60 = vadd.f32 %v1831_v57, %v1826_v54  ;;  %v1835_v61 = vadd.f32 %v1832_v58, %v1827_v55  ;;  %v1836_v62 = vadd.f32 %v1833_v59, %v1828_v56 }
 0x282   : > { %1837 = vst [vmem:[#allocation3 + $0x10] sm:$0xff] %v1834_v60  ;;  %1838 = vst [vmem:[#allocation3] sm:$0xff] %v1835_v61 }
 0x283   : > { %1839 = vst [vmem:[#allocation3 + $0x8] sm:$0xff] %v1836_v62 }
 0x284 LB: >> { %s1849_s21 = sld [smem:[#allocation13 + %s3093_s30]]  ;;  %s3093_s30 = sphi %s3552_s30, %s1845_s30  }
 0x285   : >> { %s1855_s15 = sld [smem:[#allocation14 + %s3093_s30]] }
 0x286   : >> { %s1861_s3 = sld [smem:[#allocation16 + %s3093_s30]] }
 0x287   : >> { %s1866_s4 = sld [smem:[#allocation17 + %s3093_s30]]  ;;  %s1845_s30 = sadd.s32 1, %s3093_s30  }
 0x288   : >> { %p1842_p11 = scmp.ge.s32.totalorder %s1845_s30, 16  }
 0x289   : >> { %v1846_v14 = vld [vmem:[#allocation3 + $0x10] sm:$0xff]  ;;  %v1847_v15 = vld [vmem:[#allocation3] sm:$0xff]  ;;  %1880 = vst [vmem:[#allocation4 + $0x8] sm:$0xff] (%p1842_p11), %v3108_v2  ;;  %1881 = vst [vmem:[#allocation4] sm:$0xff] (%p1842_p11), %v3108_v2  ;;  %s3570_s9 = smov (%p1842_p11), 0  }
 0x28a   : >> { %s1850_s14 = smul.u32 24, %s1849_s21  ;;  %v1848_v16 = vld [vmem:[#allocation3 + $0x8] sm:$0xff]  ;;  %1882 = vst [vmem:[#allocation4 + $0x10] sm:$0xff] (%p1842_p11), %v3108_v2  ;;  %1883 = vst [vmem:[#allocation5 + $0x10] sm:$0xff] (%p1842_p11), %v3108_v2 }
 0x28b   : >> { %s1856_s2 = smul.u32 24, %s1855_s15  ;;  %1884 = vst [vmem:[#allocation5] sm:$0xff] (%p1842_p11), %v3108_v2  ;;  %1885 = vst [vmem:[#allocation5 + $0x8] sm:$0xff] (%p1842_p11), %v3108_v2 }
 0x28c   : >> { %v1862_v63 = vstv %s1861_s3  ;;  %s1851_s1 = scalar_lea.vmem [#allocation2], %s1850_s14 }
 0x28d   : >> { %v1852_v0 = vld [vmem:[%s1851_s1] sm:$0xff]  ;;  %v1867_v1 = vstv %s1866_s4  ;;  %v1853_v3 = vld [vmem:[%s1851_s1 + $0x8] sm:$0xff]  ;;  %v1854_v4 = vld [vmem:[%s1851_s1 + $0x10] sm:$0xff]  ;;  %s1857_s8 = scalar_lea.vmem [#allocation2], %s1856_s2 }
 0x28e   : >> { %v1858_v5 = vld [vmem:[%s1857_s8] sm:$0xff]  ;;  %v1863_v6 = vmul.f32 %v1862_v63, %v1852_v0  ;;  %v1859_v7 = vld [vmem:[%s1857_s8 + $0x8] sm:$0xff]  ;;  %v1864_v8 = vmul.f32 %v1862_v63, %v1853_v3  ;;  %v1860_v9 = vld [vmem:[%s1857_s8 + $0x10] sm:$0xff]  ;;  %v1865_v10 = vmul.f32 %v1862_v63, %v1854_v4 }
 0x28f   : >> { %v1868_v11 = vmul.f32 %v1867_v1, %v1858_v5  ;;  %v1869_v12 = vmul.f32 %v1867_v1, %v1859_v7  ;;  %v1870_v13 = vmul.f32 %v1867_v1, %v1860_v9 }
 0x291   : >> { %v1871_v17 = vadd.f32 %v1868_v11, %v1863_v6  ;;  %v1872_v18 = vadd.f32 %v1869_v12, %v1864_v8  ;;  %v1873_v19 = vadd.f32 %v1870_v13, %v1865_v10 }
 0x292   : > { %1844 = sbr.rel (!%p1842_p11) target bundleno = 644 (0x284), region = 159 }
 0x293   : >> { %v1874_v20 = vmin.f32 %v1846_v14, %v1871_v17  ;;  %v1875_v21 = vmin.f32 %v1847_v15, %v1872_v18  ;;  %v1876_v22 = vmin.f32 %v1848_v16, %v1873_v19 }
 0x295   : >> { %1877 = vst [vmem:[#allocation3 + $0x10] sm:$0xff] %v1874_v20  ;;  %1878 = vst [vmem:[#allocation3] sm:$0xff] %v1875_v21 }
 0x296   : >> { %1879 = vst [vmem:[#allocation3 + $0x8] sm:$0xff] %v1876_v22 }
 0x297 LB: >> { %s3576_s20 = sshll.u32 %s3097_s9, 2  ;;  %s1891_s9 = sadd.s32 1, %s3097_s9   ;;  %s3097_s9 = sphi %s3570_s9, %s1891_s9  }
 0x298   : >> { %s1896_s16 = sld [smem:[#allocation13 + %s3576_s20]]  ;;  %s3581_s17 = sadd.s32 1, %s3576_s20 }
 0x299   : >> { %s1902_s10 = sld [smem:[#allocation14 + %s3576_s20]]  ;;  %s3589_s15 = sadd.s32 2, %s3576_s20 }
 0x29a   : >> { %s1908_s18 = sld [smem:[#allocation16 + %s3576_s20]]  ;;  %s3595_s4 = sadd.s32 3, %s3576_s20 }
 0x29b   : >> { %s1913_s30 = sld [smem:[#allocation17 + %s3576_s20]]  ;;  %p1888_p2 = scmp.ge.s32.totalorder %s1891_s9, 4  }
 0x29c   : >> { %s3586_s21 = sld [smem:[#allocation13 + %s3581_s17]]  ;;  %v3615_v36 = vld [vmem:[#allocation3 + $0x10] sm:$0xff]  ;;  %v3617_v37 = vld [vmem:[#allocation3] sm:$0xff]  ;;  %s2669_s9 = smul.u32 (%p1888_p2), 384, %s3081_s27 }
 0x29d   : >> { %s3592_s3 = sld [smem:[#allocation14 + %s3581_s17]]  ;;  %v3619_v38 = vld [vmem:[#allocation3 + $0x8] sm:$0xff]  ;;  %s2152_s27 = scalar_lea.sflag (%p1888_p2), [#allocation8], %s3313_s11 }
 0x29e   : >> { %s1897_s14 = smul.u32 24, %s1896_s16  ;;  %s1966_s2 = sld [smem:[#allocation16 + %s3581_s17]] }
 0x29f   : >> { %s1903_s1 = smul.u32 24, %s1902_s10  ;;  %s3599_s8 = sld [smem:[#allocation17 + %s3581_s17]] }
 0x2a0   : >> { %v1909_v2 = vstv %s1908_s18  ;;  %s3602_s0 = sld [smem:[#allocation13 + %s3589_s15]]  ;;  %s1898_s5 = scalar_lea.vmem [#allocation2], %s1897_s14 }
 0x2a1   : >> { %v1899_v23 = vld [vmem:[%s1898_s5] sm:$0xff]  ;;  %v1914_v24 = vstv %s1913_s30  ;;  %v1900_v25 = vld [vmem:[%s1898_s5 + $0x8] sm:$0xff]  ;;  %v1901_v26 = vld [vmem:[%s1898_s5 + $0x10] sm:$0xff]  ;;  %s3605_s6 = sld [smem:[#allocation14 + %s3589_s15]]  ;;  %s1904_s12 = scalar_lea.vmem [#allocation2], %s1903_s1 }
 0x2a2   : >> { %v1905_v27 = vld [vmem:[%s1904_s12] sm:$0xff]  ;;  %v1910_v28 = vmul.f32 %v1909_v2, %v1899_v23  ;;  %v1906_v29 = vld [vmem:[%s1904_s12 + $0x8] sm:$0xff]  ;;  %v1911_v30 = vmul.f32 %v1909_v2, %v1900_v25  ;;  %v1907_v31 = vld [vmem:[%s1904_s12 + $0x10] sm:$0xff]  ;;  %v1912_v32 = vmul.f32 %v1909_v2, %v1901_v26  ;;  %s1955_s16 = smul.u32 24, %s3586_s21  ;;  %s3609_s10 = sld [smem:[#allocation16 + %s3589_s15]] }
 0x2a3   : >> { %v1915_v33 = vmul.f32 %v1914_v24, %v1905_v27  ;;  %v1916_v34 = vmul.f32 %v1914_v24, %v1906_v29  ;;  %v1917_v35 = vmul.f32 %v1914_v24, %v1907_v31  ;;  %s1961_s18 = smul.u32 24, %s3592_s3  ;;  %s3613_s5 = sld [smem:[#allocation17 + %s3589_s15]] }
 0x2a4   : >> { %v1967_v39 = vstv %s1966_s2  ;;  %s3622_s12 = sld [smem:[#allocation13 + %s3595_s4]]  ;;  %s1956_s30 = scalar_lea.vmem [#allocation2], %s1955_s16 }
 0x2a5   : >> { %v1918_v40 = vadd.f32 %v1915_v33, %v1910_v28  ;;  %v1919_v41 = vadd.f32 %v1916_v34, %v1911_v30  ;;  %v1920_v42 = vadd.f32 %v1917_v35, %v1912_v32  ;;  %v1957_v43 = vld [vmem:[%s1956_s30] sm:$0xff]  ;;  %v1972_v44 = vstv %s3599_s8  ;;  %v1958_v45 = vld [vmem:[%s1956_s30 + $0x8] sm:$0xff]  ;;  %v1959_v46 = vld [vmem:[%s1956_s30 + $0x10] sm:$0xff]  ;;  %s3626_s21 = sld [smem:[#allocation14 + %s3595_s4]]  ;;  %s1962_s3 = scalar_lea.vmem [#allocation2], %s1961_s18 }
 0x2a6   : >> { %v1963_v47 = vld [vmem:[%s1962_s3] sm:$0xff]  ;;  %v1968_v48 = vmul.f32 %v1967_v39, %v1957_v43  ;;  %v1964_v49 = vld [vmem:[%s1962_s3 + $0x8] sm:$0xff]  ;;  %v1969_v50 = vmul.f32 %v1967_v39, %v1958_v45  ;;  %v1965_v51 = vld [vmem:[%s1962_s3 + $0x10] sm:$0xff]  ;;  %v1970_v52 = vmul.f32 %v1967_v39, %v1959_v46  ;;  %s2013_s14 = smul.u32 24, %s3602_s0  ;;  %s3630_s2 = sld [smem:[#allocation16 + %s3595_s4]] }
 0x2a7   : >> { %v1921_v53 = vsub.f32 %v3615_v36, %v1918_v40  ;;  %v1922_v54 = vsub.f32 %v3617_v37, %v1919_v41  ;;  %v1923_v55 = vsub.f32 %v3619_v38, %v1920_v42  ;;  %v1973_v56 = vmul.f32 %v1972_v44, %v1963_v47  ;;  %s2019_s1 = smul.u32 24, %s3605_s6  ;;  %s3637_s8 = sld [smem:[#allocation17 + %s3595_s4]] }
 0x2a8   : >> { %v1974_v57 = vmul.f32 %v1972_v44, %v1964_v49  ;;  %v1975_v58 = vmul.f32 %v1972_v44, %v1965_v51  ;;  %v2025_v59 = vstv %s3609_s10  ;;  %s2014_s0 = scalar_lea.vmem [#allocation2], %s2013_s14  ;;  %s2000_s30 = scvt.s32.f32 %s3581_s17 }
 0x2a9   : >> { %v1924_v60 = vmul.f32 1.442695, %v1921_v53  ;;  %v1926_v61 = vmul.f32 1.442695, %v1922_v54  ;;  %v1928_v62 = vmul.f32 1.442695, %v1923_v55  ;;  %v1976_v63 = vadd.f32 %v1973_v56, %v1968_v48  ;;  %s2116_s17 = scvt.s32.f32 %s3595_s4  ;;  %s3666_s3 = scalar_lea.hbm (%p1888_p2), %s3726_s7, %s2669_s9 }
 0x2aa   : >> { %v1977_v0 = vadd.f32 %v1974_v57, %v1969_v50  ;;  %v1978_v1 = vadd.f32 %v1975_v58, %v1970_v52  ;;  %v2015_v3 = vld [vmem:[%s2014_s0] sm:$0xff]  ;;  %v2030_v4 = vstv %s3613_s5  ;;  %v2016_v5 = vld [vmem:[%s2014_s0 + $0x8] sm:$0xff]  ;;  %v2017_v6 = vld [vmem:[%s2014_s0 + $0x10] sm:$0xff]  ;;  %s2071_s16 = smul.u32 24, %s3622_s12  ;;  %s2020_s6 = scalar_lea.vmem [#allocation2], %s2019_s1 }
 0x2ab   : >> { %2815 = vpow2.f32 %v1924_v60  ;;  %v1979_v7 = vsub.f32 %v3615_v36, %v1976_v63  ;;  %v2021_v8 = vld [vmem:[%s2020_s6] sm:$0xff]  ;;  %v2026_v9 = vmul.f32 %v2025_v59, %v2015_v3  ;;  %v2022_v10 = vld [vmem:[%s2020_s6 + $0x8] sm:$0xff]  ;;  %v2027_v11 = vmul.f32 %v2025_v59, %v2016_v5  ;;  %v2023_v12 = vld [vmem:[%s2020_s6 + $0x10] sm:$0xff]  ;;  %s2077_s10 = smul.u32 24, %s3626_s21  ;;  %s1942_s12 = scvt.s32.f32 %s3576_s20 }
 0x2ac   : >> { %2817 = vpow2.f32 %v1926_v61  ;;  %v1980_v13 = vsub.f32 %v3617_v37, %v1977_v0  ;;  %v1981_v14 = vsub.f32 %v3619_v38, %v1978_v1  ;;  %v2031_v15 = vmul.f32 %v2030_v4, %v2021_v8  ;;  %s2072_s18 = scalar_lea.vmem [#allocation2], %s2071_s16  ;;  %v1930_v56 = vld [vmem:[#allocation4 + $0x8] sm:$0xff]  ;;  %s2058_s20 = scvt.s32.f32 %s3589_s15 }
 0x2ad   : >> { %2819 = vpow2.f32 %v1928_v62  ;;  %v1982_v16 = vmul.f32 1.442695, %v1979_v7  ;;  %v2032_v17 = vmul.f32 %v2030_v4, %v2022_v10  ;;  %v2028_v18 = vmul.f32 %v2025_v59, %v2017_v6  ;;  %v2073_v19 = vld [vmem:[%s2072_s18] sm:$0xff]  ;;  %s2078_s5 = scalar_lea.vmem [#allocation2], %s2077_s10  ;;  %v2074_v24 = vld [vmem:[%s2072_s18 + $0x8] sm:$0xff]  ;;  %v2075_v29 = vld [vmem:[%s2072_s18 + $0x10] sm:$0xff] }
 0x2ae   : >> { %v1984_v20 = vmul.f32 1.442695, %v1980_v13  ;;  %v1986_v21 = vmul.f32 1.442695, %v1981_v14  ;;  %v2034_v22 = vadd.f32 %v2031_v15, %v2026_v9  ;;  %v2033_v2 = vmul.f32 %v2030_v4, %v2023_v12  ;;  %v2079_v23 = vld [vmem:[%s2078_s5] sm:$0xff]  ;;  %v2080_v28 = vld [vmem:[%s2078_s5 + $0x8] sm:$0xff] }
 0x2af   : >> { %2821 = vpow2.f32 %v1982_v16  ;;  %v2035_v25 = vadd.f32 %v2032_v17, %v2027_v11  ;;  %v2083_v26 = vstv %s3630_s2  ;;  %v2088_v27 = vstv %s3637_s8  ;;  %v2081_v33 = vld [vmem:[%s2078_s5 + $0x10] sm:$0xff]  ;;  %v1931_v59 = vld [vmem:[#allocation4] sm:$0xff]  ;;  %v1939_v63 = vld [vmem:[#allocation5 + $0x10] sm:$0xff]  ;;  %s2167_s15 = sshll.u32 (%p1888_p2), %s3550_s13, 4  ;;  %s3110_s2 = smov (%p1888_p2), [#allocation19]   ;;  %s3669_s15 = int_to_ptr.vmem [resolvable:$true] %s2167_s15 }
 0x2b0   : >> { %2823 = vpow2.f32 %v1984_v20  ;;  %v2037_v30 = vsub.f32 %v3615_v36, %v2034_v22  ;;  %v2036_v31 = vadd.f32 %v2033_v2, %v2028_v18  ;;  %v2084_v32 = vmul.f32 %v2083_v26, %v2073_v19  ;;  %v1941_v6 = vld [vmem:[#allocation5 + $0x8] sm:$0xff]  ;;  %s2985_s14 = scalar_lea.vmem (%p1888_p2), %s3669_s15, 384  ;;  %s2989_s1 = sshll.u32 (%p1888_p2), %s3110_s2, 4  ;;  %s2990_s1 = int_to_ptr.vmem [resolvable:$false] %s2989_s1 }
 0x2b1   : >> { %2825 = vpow2.f32 %v1986_v21  ;;  %v2038_v34 = vsub.f32 %v3617_v37, %v2035_v25  ;;  %v2089_v35 = vmul.f32 %v2088_v27, %v2079_v23  ;;  %v2085_v39 = vmul.f32 %v2083_v26, %v2074_v24  ;;  %p2986_p7 = scmp.ne.s32.totalorder (%p1888_p2), %s3669_s15, %s2985_s14  ;;  %s2991_s8 = scalar_lea.vmem (%p1888_p2), %s2990_s1, 768 }
 0x2b2   : >> { %v2040_v40 = vmul.f32 1.442695, %v2037_v30  ;;  %v2039_v41 = vsub.f32 %v3619_v38, %v2036_v31  ;;  %v2090_v42 = vmul.f32 %v2088_v27, %v2080_v28  ;;  %v2086_v43 = vmul.f32 %v2083_v26, %v2075_v29  ;;  %p2992_p9 = scmp.lt.s32.totalorder (%p1888_p2), %s3669_s15, %s2990_s1  ;;  %p2993_p6 = scmp.lt.s32.totalorder (%p1888_p2), %s2991_s8, %s2985_s14 }
 0x2b3   : >> { %v2042_v44 = vmul.f32 1.442695, %v2038_v34  ;;  %v2092_v45 = vadd.f32 %v2089_v35, %v2084_v32  ;;  %v2091_v46 = vmul.f32 %v2088_v27, %v2081_v33  ;;  %v1943_v51 = vstv %s1942_s12  ;;  %p2987_p3 = pnand (%p1888_p2), %p2986_p7, %p3280_p12 }
 0x2b4   : >> { %2827 = vpow2.f32 %v2040_v40  ;;  %v2044_v47 = vmul.f32 1.442695, %v2039_v41  ;;  %v2093_v48 = vadd.f32 %v2090_v42, %v2085_v39  ;;  %v2001_v1 = vstv %s2000_s30  ;;  %p2994_p8 = por (%p1888_p2), %p2993_p6, %p2992_p9 }
 0x2b5   : >> { %2829 = vpow2.f32 %v2042_v44  ;;  %v2095_v49 = vsub.f32 %v3615_v36, %v2092_v45  ;;  %v2094_v50 = vadd.f32 %v2091_v46, %v2086_v43  ;;  %v1932_v36 = vld [vmem:[#allocation4 + $0x10] sm:$0xff]  ;;  %v2059_v17 = vstv %s2058_s20  ;;  %p2988_p1 = pneg (%p1888_p2), %p2987_p3 }
 0x2b6   : >> { %2831 = vpow2.f32 %v2044_v47  ;;  %v2096_v52 = vsub.f32 %v3617_v37, %v2093_v48  ;;  %v1940_v37 = vld [vmem:[#allocation5] sm:$0xff]  ;;  %v2117_v30 = vstv %s2116_s17 }
 0x2b7   : >> { %v2098_v53 = vmul.f32 1.442695, %v2095_v49  ;;  %v2097_v54 = vsub.f32 %v3619_v38, %v2094_v50  ;;  %p2995_p10 = pnand (%p1888_p2), %p2994_p8, %p2988_p1 }
 0x2b8   : >> { %v2816_v55 = vpop.eup %2815  ;;  %v2100_v57 = vmul.f32 1.442695, %v2096_v52 }
 0x2b9   : >> { %v2818_v58 = vpop.eup %2817  ;;  %v1944_v60 = vmul.f32 %v2816_v55, %v1943_v51  ;;  %2833 = vpow2.f32 %v2098_v53  ;;  %v2102_v61 = vmul.f32 1.442695, %v2097_v54  ;;  %v1933_v3 = vadd.f32 %v2816_v55, %v1930_v56 }
 0x2ba   : >> { %v2820_v62 = vpop.eup %2819  ;;  %v1945_v0 = vmul.f32 %v2818_v58, %v1943_v51  ;;  %2835 = vpow2.f32 %v2100_v57  ;;  %v1934_v5 = vadd.f32 %v2818_v58, %v1931_v59 }
 0x2bb   : >> { %v1946_v4 = vmul.f32 %v2820_v62, %v1943_v51  ;;  %2837 = vpow2.f32 %v2102_v61  ;;  %v1935_v8 = vadd.f32 %v2820_v62, %v1932_v36  ;;  %v1947_v9 = vadd.f32 %v1944_v60, %v1939_v63 }
 0x2bc   : >> { %v2822_v38 = vpop.eup %2821  ;;  %v1948_v12 = vadd.f32 %v1945_v0, %v1940_v37 }
 0x2bd   : >> { %v2824_v7 = vpop.eup %2823  ;;  %v2002_v10 = vmul.f32 %v2822_v38, %v2001_v1  ;;  %v1949_v14 = vadd.f32 %v1946_v4, %v1941_v6  ;;  %v1991_v15 = vadd.f32 %v2822_v38, %v1933_v3 }
 0x2be   : >> { %v2826_v11 = vpop.eup %2825  ;;  %v2003_v13 = vmul.f32 %v2824_v7, %v2001_v1  ;;  %v1992_v18 = vadd.f32 %v2824_v7, %v1934_v5 }
 0x2bf   : >> { %v2004_v16 = vmul.f32 %v2826_v11, %v2001_v1  ;;  %v1993_v20 = vadd.f32 %v2826_v11, %v1935_v8  ;;  %v2005_v21 = vadd.f32 %v2002_v10, %v1947_v9 }
 0x2c0   : >> { %v2006_v2 = vadd.f32 %v2003_v13, %v1948_v12 }
 0x2c1   : >> { %v2828_v19 = vpop.eup %2827  ;;  %v2007_v25 = vadd.f32 %v2004_v16, %v1949_v14 }
 0x2c2   : >> { %v2830_v22 = vpop.eup %2829  ;;  %v2060_v23 = vmul.f32 %v2828_v19, %v2059_v17  ;;  %v2049_v26 = vadd.f32 %v2828_v19, %v1991_v15 }
 0x2c3   : >> { %v2832_v24 = vpop.eup %2831  ;;  %v2061_v27 = vmul.f32 %v2830_v22, %v2059_v17  ;;  %v2050_v28 = vadd.f32 %v2830_v22, %v1992_v18 }
 0x2c4   : >> { %v2062_v29 = vmul.f32 %v2832_v24, %v2059_v17  ;;  %v2051_v31 = vadd.f32 %v2832_v24, %v1993_v20  ;;  %v2063_v32 = vadd.f32 %v2060_v23, %v2005_v21 }
 0x2c5   : >> { %v2064_v34 = vadd.f32 %v2061_v27, %v2006_v2 }
 0x2c6   : >> { %v2834_v33 = vpop.eup %2833  ;;  %v2065_v39 = vadd.f32 %v2062_v29, %v2007_v25 }
 0x2c7   : >> { %v2836_v35 = vpop.eup %2835  ;;  %v2107_v40 = vadd.f32 %v2834_v33, %v2049_v26  ;;  %v2118_v41 = vmul.f32 %v2834_v33, %v2117_v30 }
 0x2c8   : >> { %v2838_v42 = vpop.eup %2837  ;;  %v2108_v43 = vadd.f32 %v2836_v35, %v2050_v28  ;;  %v2119_v44 = vmul.f32 %v2836_v35, %v2117_v30 }
 0x2c9   : >> { %2110 = vst [vmem:[#allocation4 + $0x8] sm:$0xff] %v2107_v40  ;;  %v2109_v45 = vadd.f32 %v2838_v42, %v2051_v31  ;;  %v2121_v46 = vadd.f32 %v2118_v41, %v2063_v32  ;;  %v2120_v47 = vmul.f32 %v2838_v42, %v2117_v30  ;;  %1890 = sbr.rel (!%p1888_p2) target bundleno = 663 (0x297), region = 170 }
 0x2ca   : >> { %2111 = vst [vmem:[#allocation4] sm:$0xff] %v2108_v43  ;;  %v2122_v48 = vadd.f32 %v2119_v44, %v2064_v34 }
 0x2cb   : >> { %2112 = vst [vmem:[#allocation4 + $0x10] sm:$0xff] %v2109_v45  ;;  %2124 = vst [vmem:[#allocation5 + $0x10] sm:$0xff] %v2121_v46  ;;  %v2123_v49 = vadd.f32 %v2120_v47, %v2065_v39 }
 0x2cc   : >> { %2125 = vst [vmem:[#allocation5] sm:$0xff] %v2122_v48 }
 0x2cd   : >> { %2126 = vst [vmem:[#allocation5 + $0x8] sm:$0xff] %v2123_v49 }
 0x2d0   : > { %v2127_v50 = vld [vmem:[#allocation4 + $0x8] sm:$0xff] }
 0x2d1   : > { %v2128_v51 = vld [vmem:[#allocation4] sm:$0xff]  ;;  %2839 = vrcp.f32 %v2127_v50 }
 0x2d2   : > { %v2129_v52 = vld [vmem:[#allocation4 + $0x10] sm:$0xff]  ;;  %2841 = vrcp.f32 %v2128_v51  ;;  %v2142_v60 = vld [vmem:[#allocation5 + $0x10] sm:$0xff] }
 0x2d3   : > { %2843 = vrcp.f32 %v2129_v52  ;;  %v2143_v36 = vld [vmem:[#allocation5] sm:$0xff] }
 0x2d4   : > { %v2144_v1 = vld [vmem:[#allocation5 + $0x8] sm:$0xff] }
 0x2de   : > { %v2840_v53 = vpop.eup %2839 }
 0x2df   : > { %v2842_v54 = vpop.eup %2841  ;;  %v2133_v55 = vmul.f32 %v2840_v53, %v2127_v50 }
 0x2e0   : > { %v2844_v56 = vpop.eup %2843  ;;  %v2134_v57 = vmul.f32 %v2842_v54, %v2128_v51 }
 0x2e1   : > { %v2136_v58 = vsub.f32 2.0, %v2133_v55  ;;  %v2135_v59 = vmul.f32 %v2844_v56, %v2129_v52 }
 0x2e2   : > { %v2137_v61 = vsub.f32 2.0, %v2134_v57 }
 0x2e3   : > { %v2139_v62 = vmul.f32 %v2840_v53, %v2136_v58  ;;  %v2138_v63 = vsub.f32 2.0, %v2135_v59 }
 0x2e4   : > { %v2140_v0 = vmul.f32 %v2842_v54, %v2137_v61 }
 0x2e5   : > { %v2145_v3 = vmul.f32 %v2142_v60, %v2139_v62  ;;  %v2141_v37 = vmul.f32 %v2844_v56, %v2138_v63 }
 0x2e6   : > { %v2146_v4 = vmul.f32 %v2143_v36, %v2140_v0 }
 0x2e7   : > { %2148 = vst [vmem:[%s3550_s13] sm:$0xff] %v2145_v3  ;;  %v2147_v38 = vmul.f32 %v2144_v1, %v2141_v37 }
 0x2e8   : > { %2149 = vst [vmem:[%s3550_s13 + $0x8] sm:$0xff] %v2146_v4 }
 0x2e9   : > { %2150 = vst [vmem:[%s3550_s13 + $0x10] sm:$0xff] %v2147_v38 }
 0x2ea   : > { %2998 = shalt.err (!%p2995_p10)
}
 0x2eb   : > { %s2999_s13 = scalar_lea.hbm %s3666_s3, 384  ;;  %s3003_s6 = scalar_lea.hbm %s3726_s7, 768 }
 0x2ec   : > { %p3000_p4 = scmp.ne.s32.totalorder %s3666_s3, %s2999_s13  ;;  %p3004_p11 = scmp.lt.s32.totalorder %s3666_s3, %s3726_s7 }
 0x2ed   : > { %p3005_p2 = scmp.lt.s32.totalorder %s3003_s6, %s2999_s13 }
 0x2ee   : > { %p3001_p13 = pnand %p3000_p4, %p3280_p12 }
 0x2ef   : > { %p3006_p7 = por %p3005_p2, %p3004_p11 }
 0x2f0   : > { %p3002_p5 = pneg %p3001_p13 }
 0x2f2   : > { %p3007_p3 = pnand %p3006_p7, %p3002_p5 }
 0x2f4   : > { %3010 = shalt.err (!%p3007_p3)
}
 0x2f5   : > { %s3111_s5 = smov 128   ;;  %s3112_s12 = smov 8  }
 0x2f6   : > { %2696 = dma.vmem_to_hbm [thread:$0]  (%p3280_p12), %s3669_s15, 384, %s3666_s3, %s2152_s27, %s3111_s5, %s3111_s5, %s3112_s12  }
 0x2f7 PF: > { %s2182_s30 = sand.u32 1, %s3069_s24   ;;  %p3762_p1 = scmp.ge.s32.totalorder %s3089_s29, 2 }
 0x2f8   : > { %s2183_s20 = scalar_lea.sflag [#allocation8], %s2182_s30 }
 0x2f9   : > { %p2722_p9 = pnand %p3762_p1, %p3287_p0 }
 0x2fb   : > { %p2723_p6 = pneg %p2722_p9 }
 0x2fd   : > { %3064 = dma.done.wait (%p2723_p6), %s2183_s20, 384  }
 0x2fe   : > { %3066 = vsyncadd (%p2723_p6), %s2183_s20, 4294966912  ;;  %s27_s29 = sadd.s32 1, %s3089_s29   ;;  %s3763_s19 = sld [smem:[#allocation26_spill]] }
 0x2ff   : > { %p24_p8 = scmp.ge.s32.totalorder %s27_s29, 4   ;;  %s3764_s24 = smov %s3073_s25 }
 0x300   : > { %s3765_s25 = smov %s3077_s26  ;;  %s3766_s26 = smov %s3285_s22 }
 0x301   : > { %s3767_s27 = smov %s3085_s28  ;;  %26 = sbr.rel (!%p24_p8) target bundleno = 18 (0x12), region = 181 }
 0x304   : > { %s3768_s28 = smov %s3763_s19 }
 0x306   :  { %2188 = vsyncpa [#allocation7], 1 }
 0x307   :  { %2190 = vsyncpa [#allocation7 + $0x1], 1 }
 0x308   :  { %2191 = vsyncpa [#allocation11], 1 }
 0x309   :  { %2192 = vsyncpa [#allocation8], 1 }
 0x30a   :  { %2194 = vsyncpa [#allocation8 + $0x1], 1 }
 0x30b   :  { %2195 = vsyncpa [#allocation9], 1 }
 0x30c   :  { %2197 = vsyncpa [#allocation9 + $0x1], 1 }
 0x30d   :  { %2198 = vsyncpa [#allocation15], 1 }
 0x30e   :  { %2199 = vsyncpa [#allocation18], 1 }

</bundles_post_ra>
